<compile_context>
chip_gen: v6e
topology: v6e:2x2x1
jax: 0.10.0
libtpu: 0.0.40
codegen_flags: <defaults>
</compile_context>

<pallas_src>
import jax
import jax.numpy as jnp
from jax.experimental import pallas as pl
from jax.experimental.pallas import tpu as pltpu

IN_DIM = 784
H1 = 1000
H2 = 150
OUT_DIM = 27

# Lane-aligned (padded) dims used inside the kernel.
H1P = 1024
H2P = 256
OUTP = 128


def _round_up(n, m):
    return ((n + m - 1) // m) * m


def _pad_to(a, shape):
    return jnp.pad(a, [(0, t - s) for s, t in zip(a.shape, shape)])


def _mlp_kernel(x_ref, w1_ref, b1_ref, w2_ref, b2_ref, w3_ref, b3_ref, o_ref):
    # fc1 + ReLU  (bf16 operands, f32 accumulate)
    x = x_ref[...].astype(jnp.bfloat16)
    h1 = jnp.dot(x, w1_ref[...], preferred_element_type=jnp.float32)
    h1 = jnp.maximum(h1 + b1_ref[...], 0.0)
    # fc2 + ReLU
    h2 = jnp.dot(h1.astype(jnp.bfloat16), w2_ref[...],
                 preferred_element_type=jnp.float32)
    h2 = jnp.maximum(h2 + b2_ref[...], 0.0)
    # fc3 (logits; padded output lanes are exactly zero)
    out = jnp.dot(h2.astype(jnp.bfloat16), w3_ref[...],
                  preferred_element_type=jnp.float32)
    o_ref[...] = (out + b3_ref[...]).astype(o_ref.dtype)


def two_fc_mnn_forward(x, packed_params, *, tile_batch=256):
    """x: (B, C, H, W) float32 with C*H*W == 784.  Returns (B, 27) float32.

    packed_params: output of prepare_params() (padded bf16 weights, f32 biases).
    """
    w1, b1, w2, b2, w3, b3 = packed_params
    B = x.shape[0]
    x2d = x.reshape(B, -1).astype(jnp.float32)  # row-major == torch .view(-1, 784)
    assert x2d.shape[1] == IN_DIM

    # Batch tile: sublane-aligned (>=8), capped at tile_batch (MXU-friendly 256).
    TB = min(tile_batch, _round_up(max(B, 1), 8))
    B_pad = _round_up(B, TB)
    if B_pad != B:
        x2d = jnp.pad(x2d, ((0, B_pad - B), (0, 0)))
    grid = (pl.cdiv(B_pad, TB),)

    resident = lambda shape: pl.BlockSpec(shape, lambda i: (0, 0))

    flops = 2 * B_pad * (IN_DIM * H1P + H1P * H2P + H2P * OUTP)
    bytes_accessed = (
        x2d.size * 4
        + (w1.size + w2.size + w3.size) * 2        # bf16 weights
        + (b1.size + b2.size + b3.size) * 4        # f32 biases
        + B_pad * OUTP * 4                         # f32 output
    )

    out = pl.pallas_call(
        _mlp_kernel,
        out_shape=jax.ShapeDtypeStruct((B_pad, OUTP), jnp.float32),
        grid=grid,
        in_specs=[
            pl.BlockSpec((TB, IN_DIM), lambda i: (i, 0)),   # x tile (pipelined)
            resident((IN_DIM, H1P)),                        # weights: DMA'd once,
            resident((1, H1P)),                             # stay VMEM-resident
            resident((H1P, H2P)),
            resident((1, H2P)),
            resident((H2P, OUTP)),
            resident((1, OUTP)),
        ],
        out_specs=pl.BlockSpec((TB, OUTP), lambda i: (i, 0)),
        compiler_params=pltpu.CompilerParams(
            dimension_semantics=("parallel",),
            vmem_limit_bytes=32 << 20,
        ),
        cost_estimate=pl.CostEstimate(
            flops=flops, transcendentals=0, bytes_accessed=bytes_accessed),
    )(x2d, w1, b1, w2, b2, w3, b3)

    return out[:B, :OUT_DIM]


def init_params(key):
    """Deterministic init matching torch.nn.Linear default: U(-1/sqrt(fan_in), 1/sqrt(fan_in)).

    Weights stored (in_features, out_features) so x @ W + b == torch x @ W_pt.T + b.
    """
    ks = jax.random.split(key, 6)

    def linear(kw, kb, fan_in, fan_out):
        bound = 1.0 / jnp.sqrt(fan_in)
        w = jax.random.uniform(kw, (fan_in, fan_out), jnp.float32, -bound, bound)
        b = jax.random.uniform(kb, (1, fan_out), jnp.float32, -bound, bound)
        return w, b

    w1, b1 = linear(ks[0], ks[1], IN_DIM, H1)
    w2, b2 = linear(ks[2], ks[3], H1, H2)
    w3, b3 = linear(ks[4], ks[5], H2, OUT_DIM)
    return (w1, b1, w2, b2, w3, b3)


def prepare_params(params):
    """Zero-pad to lane-aligned shapes and cast weights to bf16 (one-time cost)."""
    w1, b1, w2, b2, w3, b3 = params
    return (
        _pad_to(w1, (IN_DIM, H1P)).astype(jnp.bfloat16),
        _pad_to(b1, (1, H1P)).astype(jnp.float32),
        _pad_to(w2, (H1P, H2P)).astype(jnp.bfloat16),
        _pad_to(b2, (1, H2P)).astype(jnp.float32),
        _pad_to(w3, (H2P, OUTP)).astype(jnp.bfloat16),
        _pad_to(b3, (1, OUTP)).astype(jnp.float32),
    )


def _reference(x, packed_params):
    """f32 reference using the same bf16-rounded operands as the kernel."""
    w1, b1, w2, b2, w3, b3 = packed_params
    f32 = lambda a: a.astype(jnp.float32)
    r16 = lambda a: a.astype(jnp.bfloat16).astype(jnp.float32)
    x2d = x.reshape(x.shape[0], -1).astype(jnp.float32)
    h1 = jnp.maximum(r16(x2d) @ f32(w1) + b1, 0.0)
    h2 = jnp.maximum(r16(h1) @ f32(w2) + b2, 0.0)
    out = r16(h2) @ f32(w3) + b3
    return out[:, :OUT_DIM]


if __name__ == "__main__":
    key = jax.random.PRNGKey(0)
    kp, kx1, kx2 = jax.random.split(key, 3)
    packed = prepare_params(init_params(kp))

    # MNIST-style input: batch=2, NCHW (2, 1, 28, 28) -> flattens to (2, 784)
    x_small = jax.random.normal(kx1, (2, 1, 28, 28), jnp.float32)
    out_small = jax.block_until_ready(two_fc_mnn_forward(x_small, packed))
    ref_small = _reference(x_small, packed)
    assert out_small.shape == (2, OUT_DIM), out_small.shape
    assert jnp.allclose(out_small, ref_small, atol=1e-3, rtol=1e-3), \
        "mismatch vs reference (small batch)"

    # Larger, non-multiple batch to exercise the batch grid + padding path.
    x_big = jax.random.normal(kx2, (300, 1, 28, 28), jnp.float32)
    out_big = jax.block_until_ready(two_fc_mnn_forward(x_big, packed))
    ref_big = _reference(x_big, packed)
    assert out_big.shape == (300, OUT_DIM), out_big.shape
    assert jnp.allclose(out_big, ref_big, atol=1e-3, rtol=1e-3), \
        "mismatch vs reference (gridded batch)"

    print("KERNEL_OK")
</pallas_src>

<mosaic_0001>
module attributes {stable_mosaic.version = 11 : i64} {
  func.func @_mlp_kernel(%arg0: i32, %arg1: memref<8x784xf32, #tpu.memory_space<vmem>>, %arg2: memref<784x1024xbf16, #tpu.memory_space<vmem>>, %arg3: memref<1x1024xf32, #tpu.memory_space<vmem>>, %arg4: memref<1024x256xbf16, #tpu.memory_space<vmem>>, %arg5: memref<1x256xf32, #tpu.memory_space<vmem>>, %arg6: memref<256x128xbf16, #tpu.memory_space<vmem>>, %arg7: memref<1x128xf32, #tpu.memory_space<vmem>>, %arg8: memref<8x128xf32, #tpu.memory_space<vmem>>) attributes {dimension_semantics = [#tpu.dimension_semantics<parallel>], iteration_bounds = array<i64: 1>, scalar_prefetch = 0 : i64, scratch_operands = 0 : i64, tpu.core_type = #tpu.core_type<tc>, window_params = [{transform_indices = @transform_0, window_bounds = array<i64: 8, 784>}, {pipeline_mode = #tpu.pipeline_mode<synchronous>, transform_indices = @transform_1, window_bounds = array<i64: 784, 1024>}, {pipeline_mode = #tpu.pipeline_mode<synchronous>, transform_indices = @transform_2, window_bounds = array<i64: 1, 1024>}, {pipeline_mode = #tpu.pipeline_mode<synchronous>, transform_indices = @transform_3, window_bounds = array<i64: 1024, 256>}, {pipeline_mode = #tpu.pipeline_mode<synchronous>, transform_indices = @transform_4, window_bounds = array<i64: 1, 256>}, {pipeline_mode = #tpu.pipeline_mode<synchronous>, transform_indices = @transform_5, window_bounds = array<i64: 256, 128>}, {pipeline_mode = #tpu.pipeline_mode<synchronous>, transform_indices = @transform_6, window_bounds = array<i64: 1, 128>}, {transform_indices = @transform_7, window_bounds = array<i64: 8, 128>}]} {
    %c0 = arith.constant 0 : index
    %c0_0 = arith.constant 0 : index
    %0 = vector.load %arg1[%c0, %c0_0] : memref<8x784xf32, #tpu.memory_space<vmem>>, vector<8x784xf32>
    %1 = arith.truncf %0 : vector<8x784xf32> to vector<8x784xbf16>
    %c0_1 = arith.constant 0 : index
    %c0_2 = arith.constant 0 : index
    %2 = vector.load %arg2[%c0_1, %c0_2] : memref<784x1024xbf16, #tpu.memory_space<vmem>>, vector<784x1024xbf16>
    %cst = arith.constant dense<0.000000e+00> : vector<8x1024xf32>
    %3 = tpu.matmul %1, %2, %cst {dimension_numbers = #tpu.dot_dimension_numbers<[1], [0], [0], [1], [0, 0, 1, 1], [], []>} : vector<8x784xbf16>, vector<784x1024xbf16>, vector<8x1024xf32> -> vector<8x1024xf32>
    %c0_3 = arith.constant 0 : index
    %c0_4 = arith.constant 0 : index
    %4 = vector.load %arg3[%c0_3, %c0_4] : memref<1x1024xf32, #tpu.memory_space<vmem>>, vector<1x1024xf32>
    %5 = vector.broadcast %4 : vector<1x1024xf32> to vector<8x1024xf32>
    %6 = arith.addf %3, %5 : vector<8x1024xf32>
    %cst_5 = arith.constant 0.000000e+00 : f32
    %7 = vector.broadcast %cst_5 : f32 to vector<8x1024xf32>
    %8 = arith.maximumf %6, %7 : vector<8x1024xf32>
    %9 = arith.truncf %8 : vector<8x1024xf32> to vector<8x1024xbf16>
    %c0_6 = arith.constant 0 : index
    %c0_7 = arith.constant 0 : index
    %10 = vector.load %arg4[%c0_6, %c0_7] : memref<1024x256xbf16, #tpu.memory_space<vmem>>, vector<1024x256xbf16>
    %cst_8 = arith.constant dense<0.000000e+00> : vector<8x256xf32>
    %11 = tpu.matmul %9, %10, %cst_8 {dimension_numbers = #tpu.dot_dimension_numbers<[1], [0], [0], [1], [0, 0, 1, 1], [], []>} : vector<8x1024xbf16>, vector<1024x256xbf16>, vector<8x256xf32> -> vector<8x256xf32>
    %c0_9 = arith.constant 0 : index
    %c0_10 = arith.constant 0 : index
    %12 = vector.load %arg5[%c0_9, %c0_10] : memref<1x256xf32, #tpu.memory_space<vmem>>, vector<1x256xf32>
    %13 = vector.broadcast %12 : vector<1x256xf32> to vector<8x256xf32>
    %14 = arith.addf %11, %13 : vector<8x256xf32>
    %cst_11 = arith.constant 0.000000e+00 : f32
    %15 = vector.broadcast %cst_11 : f32 to vector<8x256xf32>
    %16 = arith.maximumf %14, %15 : vector<8x256xf32>
    %17 = arith.truncf %16 : vector<8x256xf32> to vector<8x256xbf16>
    %c0_12 = arith.constant 0 : index
    %c0_13 = arith.constant 0 : index
    %18 = vector.load %arg6[%c0_12, %c0_13] : memref<256x128xbf16, #tpu.memory_space<vmem>>, vector<256x128xbf16>
    %cst_14 = arith.constant dense<0.000000e+00> : vector<8x128xf32>
    %19 = tpu.matmul %17, %18, %cst_14 {dimension_numbers = #tpu.dot_dimension_numbers<[1], [0], [0], [1], [0, 0, 1, 1], [], []>} : vector<8x256xbf16>, vector<256x128xbf16>, vector<8x128xf32> -> vector<8x128xf32>
    %c0_15 = arith.constant 0 : index
    %c0_16 = arith.constant 0 : index
    %20 = vector.load %arg7[%c0_15, %c0_16] : memref<1x128xf32, #tpu.memory_space<vmem>>, vector<1x128xf32>
    %21 = vector.broadcast %20 : vector<1x128xf32> to vector<8x128xf32>
    %22 = arith.addf %19, %21 : vector<8x128xf32>
    %c0_17 = arith.constant 0 : index
    %c0_18 = arith.constant 0 : index
    %23 = vector.load %arg8[%c0_17, %c0_18] : memref<8x128xf32, #tpu.memory_space<vmem>>, vector<8x128xf32>
    tpu.vector_store %arg8[%c0_17, %c0_18], %22 {strides = array<i32>} : memref<8x128xf32, #tpu.memory_space<vmem>>, vector<8x128xf32>,
    return
  }
  func.func @transform_0(%arg0: i32) -> (i32, i32) {
    %c0_i32 = arith.constant 0 : i32
    %c0_i32_0 = arith.constant 0 : i32
    return %arg0, %c0_i32 : i32, i32
  }
  func.func @transform_1(%arg0: i32) -> (i32, i32) {
    %c0_i32 = arith.constant 0 : i32
    %c0_i32_0 = arith.constant 0 : i32
    %c0_i32_1 = arith.constant 0 : i32
    return %c0_i32, %c0_i32_0 : i32, i32
  }
  func.func @transform_2(%arg0: i32) -> (i32, i32) {
    %c0_i32 = arith.constant 0 : i32
    %c0_i32_0 = arith.constant 0 : i32
    %c0_i32_1 = arith.constant 0 : i32
    return %c0_i32, %c0_i32_0 : i32, i32
  }
  func.func @transform_3(%arg0: i32) -> (i32, i32) {
    %c0_i32 = arith.constant 0 : i32
    %c0_i32_0 = arith.constant 0 : i32
    %c0_i32_1 = arith.constant 0 : i32
    return %c0_i32, %c0_i32_0 : i32, i32
  }
  func.func @transform_4(%arg0: i32) -> (i32, i32) {
    %c0_i32 = arith.constant 0 : i32
    %c0_i32_0 = arith.constant 0 : i32
    %c0_i32_1 = arith.constant 0 : i32
    return %c0_i32, %c0_i32_0 : i32, i32
  }
  func.func @transform_5(%arg0: i32) -> (i32, i32) {
    %c0_i32 = arith.constant 0 : i32
    %c0_i32_0 = arith.constant 0 : i32
    %c0_i32_1 = arith.constant 0 : i32
    return %c0_i32, %c0_i32_0 : i32, i32
  }
  func.func @transform_6(%arg0: i32) -> (i32, i32) {
    %c0_i32 = arith.constant 0 : i32
    %c0_i32_0 = arith.constant 0 : i32
    %c0_i32_1 = arith.constant 0 : i32
    return %c0_i32, %c0_i32_0 : i32, i32
  }
  func.func @transform_7(%arg0: i32) -> (i32, i32) {
    %c0_i32 = arith.constant 0 : i32
    %c0_i32_0 = arith.constant 0 : i32
    return %arg0, %c0_i32 : i32, i32
  }
}

</mosaic_0001>

<bundles_post_ra>
// kernel: tpu_custom_call.1
= control target key start
LH: loop header
LB: loop body
LE: loop exit
PB: predicated region body
PF: predicated region fallthrough
CT: control target
= control target key end

     0   :  { %12 = vsyncpa [#allocation3], 0  ;;  %s5502_s0 = inlined_call_operand.hbm [shape: f32[8,784], index: 0, kind: input, shape index: {}]   ;;  %s5503_s1 = inlined_call_operand.hbm [shape: bf16[784,1024], index: 1, kind: input, shape index: {}]   ;;  %s5504_s2 = inlined_call_operand.hbm [shape: f32[1,1024], index: 2, kind: input, shape index: {}]   ;;  %s5505_s3 = inlined_call_operand.hbm [shape: bf16[1024,256], index: 3, kind: input, shape index: {}]   ;;  %s5506_s4 = inlined_call_operand.hbm [shape: f32[1,256], index: 4, kind: input, shape index: {}]   ;;  %s5507_s5 = inlined_call_operand.hbm [shape: bf16[256,128], index: 5, kind: input, shape index: {}]   ;;  %s5508_s6 = inlined_call_operand.hbm [shape: f32[1,128], index: 6, kind: input, shape index: {}]   ;;  %s5509_s7 = inlined_call_operand.hbm [shape: f32[8,128], index: 7, kind: output, shape index: {}]  }
   0x1   :  { %13 = vsyncpa [#allocation6], 0 }
   0x2   :  { %14 = vsyncpa [#allocation9], 0 }
   0x3   :  { %15 = vsyncpa [#allocation12], 0 }
   0x4   :  { %16 = vsyncpa [#allocation4], 0  ;;  %s5298_s24 = smov [#allocation5]  }
   0x5   :  { %s32_s25 = sshll.u32 %s5298_s24, 4  ;;  %s33_s25 = int_to_ptr.vmem [resolvable:$true] %s32_s25 }
   0x6   :  { %s5136_s26 = scalar_lea.vmem %s33_s25, 50176  ;;  %p5141_p1 = scmp.lt.s32.totalorder %s33_s25, %s33_s25 }
   0x7   :  { %p5137_p0 = scmp.ne.s32.totalorder %s33_s25, %s5136_s26  ;;  %p5142_p2 = scmp.lt.s32.totalorder %s5136_s26, %s5136_s26 }
   0x9   :  { %p5143_p3 = por %p5142_p2, %p5141_p1 }
   0xb   :  { %p5144_p4 = pnand %p5143_p3, %p5137_p0 }
   0xd   :  { %5147 = shalt.err (!%p5144_p4)
}
   0xe   :  { %s5299_s27 = smov 512   ;;  %s5300_s28 = smov 32  }
   0xf   :  { %38 = dma.hbm_to_vmem [thread:$0]  %s5503_s1, 50176, %s33_s25, [#allocation6], %s5299_s27, %s5299_s27, %s5300_s28  }
  0x10   :  { %s5301_s8 = smov [#allocation8]  }
  0x11   :  { %s54_s9 = sshll.u32 %s5301_s8, 4  ;;  %s55_s9 = int_to_ptr.vmem [resolvable:$true] %s54_s9 }
  0x12   :  { %s5156_s10 = scalar_lea.vmem %s55_s9, 16384  ;;  %p5161_p6 = scmp.lt.s32.totalorder %s55_s9, %s55_s9 }
  0x13   :  { %p5157_p5 = scmp.ne.s32.totalorder %s55_s9, %s5156_s10  ;;  %p5162_p7 = scmp.lt.s32.totalorder %s5156_s10, %s5156_s10 }
  0x15   :  { %p5163_p8 = por %p5162_p7, %p5161_p6 }
  0x17   :  { %p5164_p9 = pnand %p5163_p8, %p5157_p5 }
  0x19   :  { %5167 = shalt.err (!%p5164_p9)
}
  0x1a   :  { %s5302_s11 = smov 128   ;;  %s5303_s12 = smov 8  }
  0x1b   :  { %60 = dma.hbm_to_vmem [thread:$0]  %s5505_s3, 16384, %s55_s9, [#allocation9], %s5302_s11, %s5302_s11, %s5303_s12  }
  0x1c   :  { %s5304_s15 = smov [#allocation11]  }
  0x1d   :  { %s76_s16 = sshll.u32 %s5304_s15, 4  ;;  %s77_s16 = int_to_ptr.vmem [resolvable:$true] %s76_s16 }
  0x1e   :  { %s5176_s1 = scalar_lea.vmem %s77_s16, 2048  ;;  %p5181_p11 = scmp.lt.s32.totalorder %s77_s16, %s77_s16 }
  0x1f   :  { %p5177_p10 = scmp.ne.s32.totalorder %s77_s16, %s5176_s1  ;;  %p5182_p12 = scmp.lt.s32.totalorder %s5176_s1, %s5176_s1 }
  0x21   :  { %p5183_p13 = por %p5182_p12, %p5181_p11 }
  0x23   :  { %p5184_p0 = pnand %p5183_p13, %p5177_p10 }
  0x25   :  { %5187 = shalt.err (!%p5184_p0)
}
  0x26   :  { %s5305_s17 = smov 64   ;;  %s5306_s18 = smov 4  }
  0x27   :  { %82 = dma.hbm_to_vmem [thread:$0]  %s5507_s5, 2048, %s77_s16, [#allocation12], %s5305_s17, %s5305_s17, %s5306_s18  }
  0x28   :  { %s5307_s21 = smov [#allocation2]   ;;  %s5308_s3 = smov [#allocation7]  }
  0x29   :  { %s23_s22 = sshll.u32 %s5307_s21, 4  ;;  %s45_s23 = sshll.u32 %s5308_s3, 4  ;;  %s24_s22 = int_to_ptr.vmem [resolvable:$true] %s23_s22  ;;  %s46_s23 = int_to_ptr.vmem [resolvable:$true] %s45_s23 }
  0x2a   :  { %s5196_s24 = scalar_lea.vmem %s24_s22, 896  ;;  %p5201_p2 = scmp.lt.s32.totalorder %s24_s22, %s24_s22 }
  0x2b   :  { %p5197_p1 = scmp.ne.s32.totalorder %s24_s22, %s5196_s24  ;;  %p5202_p3 = scmp.lt.s32.totalorder %s5196_s24, %s5196_s24 }
  0x2d   :  { %p5203_p4 = por %p5202_p3, %p5201_p2 }
  0x2f   :  { %p5204_p5 = pnand %p5203_p4, %p5197_p1 }
  0x31   :  { %5207 = shalt.err (!%p5204_p5)
}
  0x32   :  { %26 = dma.hbm_to_vmem [thread:$0]  %s5502_s0, 896, %s24_s22, [#allocation3]  }
  0x33   :  { %s5216_s27 = scalar_lea.vmem %s46_s23, 128  ;;  %p5221_p7 = scmp.lt.s32.totalorder %s46_s23, %s46_s23 }
  0x34   :  { %p5217_p6 = scmp.ne.s32.totalorder %s46_s23, %s5216_s27  ;;  %p5222_p8 = scmp.lt.s32.totalorder %s5216_s27, %s5216_s27 }
  0x36   :  { %p5223_p9 = por %p5222_p8, %p5221_p7 }
  0x38   :  { %p5224_p10 = pnand %p5223_p9, %p5217_p6 }
  0x3a   :  { %5227 = shalt.err (!%p5224_p10)
}
  0x3b   :  { %48 = dma.hbm_to_vmem [thread:$0]  %s5504_s2, 128, %s46_s23, [#allocation6]  }
  0x3c   :  { %s5309_s29 = smov [#allocation10]   ;;  %s5310_s8 = smov [#allocation13]  }
  0x3d   :  { %s67_s30 = sshll.u32 %s5309_s29, 4  ;;  %s89_s9 = sshll.u32 %s5310_s8, 4  ;;  %s68_s30 = int_to_ptr.vmem [resolvable:$true] %s67_s30  ;;  %s90_s9 = int_to_ptr.vmem [resolvable:$true] %s89_s9 }
  0x3e   :  { %s5236_s10 = scalar_lea.vmem %s68_s30, 32  ;;  %p5241_p12 = scmp.lt.s32.totalorder %s68_s30, %s68_s30 }
  0x3f   :  { %p5237_p11 = scmp.ne.s32.totalorder %s68_s30, %s5236_s10  ;;  %p5242_p13 = scmp.lt.s32.totalorder %s5236_s10, %s5236_s10 }
  0x41   :  { %p5243_p0 = por %p5242_p13, %p5241_p12 }
  0x43   :  { %p5244_p1 = pnand %p5243_p0, %p5237_p11 }
  0x45   :  { %5247 = shalt.err (!%p5244_p1)
}
  0x46   :  { %70 = dma.hbm_to_vmem [thread:$0]  %s5506_s4, 32, %s68_s30, [#allocation9]  }
  0x47   :  { %s5256_s12 = scalar_lea.vmem %s90_s9, 16  ;;  %s5260_s2 = scalar_lea.vmem %s90_s9, 32 }
  0x48   :  { %p5257_p2 = scmp.ne.s32.totalorder %s90_s9, %s5256_s12  ;;  %p5261_p3 = scmp.lt.s32.totalorder %s90_s9, %s90_s9 }
  0x49   :  { %p5262_p4 = scmp.lt.s32.totalorder %s5260_s2, %s5256_s12 }
  0x4b   :  { %p5263_p5 = por %p5262_p4, %p5261_p3 }
  0x4d   :  { %p5264_p6 = pnand %p5263_p5, %p5257_p2 }
  0x4f   :  { %5267 = shalt.err (!%p5264_p6)
}
  0x50   :  { %92 = dma.hbm_to_vmem [thread:$0]  %s5508_s6, 16, %s90_s9, [#allocation12]  }
  0x51   :  { %5288 = dma.done.wait [#allocation3], 896  }
  0x52   :  { %5289 = vsyncadd [#allocation3], 4294966400 }
  0x53   :  { %5290 = dma.done.wait [#allocation6], 50304  }
  0x54   :  { %5291 = vsyncadd [#allocation6], 4294916992 }
  0x55   :  { %5292 = dma.done.wait [#allocation9], 16416  }
  0x56   :  { %5293 = vsyncadd [#allocation9], 4294950880 }
  0x57   :  { %5294 = dma.done.wait [#allocation12], 2064  }
  0x58   :  { %5295 = vsyncadd [#allocation12], 4294965232  ;;  %v185_v0 = vld [vmem:[#allocation5 + $0x1c0] sm:$0xff]  ;;  %v116_v53 = vld [vmem:[#allocation2 + $0x8] sm:$0xff]  ;;  %vm2523_vm0 = vcmask 130048   ;;  %s5312_s4 = smov [#allocation14]  }
  0x59   :  { %v189_v1 = vld [vmem:[#allocation5 + $0x1e0] sm:$0xff]  ;;  %v5374_v58 = vpack.c.bf16 %v116_v53, %v116_v53  ;;  %s4329_s6 = sshll.u32 %s5312_s4, 4  ;;  %s4330_s6 = int_to_ptr.vmem [resolvable:$true] %s4329_s6 }
  0x5a   :  { %v313_v2 = vld [vmem:[#allocation5 + $0x5c0] sm:$0xff]  ;;  %v4398_v3 = vcombine.high %v185_v0, %v189_v1  ;;  %v4397_v5 = vcombine.low %v185_v0, %v189_v1  ;;  %s5268_s15 = scalar_lea.vmem %s4330_s6, 128  ;;  %p5273_p8 = scmp.lt.s32.totalorder %s4330_s6, %s4330_s6 }
  0x5b   :  { %v317_v4 = vld [vmem:[#allocation5 + $0x5e0] sm:$0xff]  ;;  %2559 = vmatprep.mubr.bf16.mxu0 %v5374_v58  ;;  %p5269_p7 = scmp.ne.s32.totalorder %s4330_s6, %s5268_s15  ;;  %p5274_p9 = scmp.lt.s32.totalorder %s5268_s15, %s5268_s15 }
  0x5c   :  { %v177_v6 = vld [vmem:[#allocation5 + $0x180] sm:$0xff]  ;;  %v4526_v8 = vcombine.high %v313_v2, %v317_v4  ;;  %v4525_v9 = vcombine.low %v313_v2, %v317_v4  ;;  %2527 = vmatprep.subr.bf16.mxu0 %v4398_v3 }
  0x5d   :  { %v181_v7 = vld [vmem:[#allocation5 + $0x1a0] sm:$0xff]  ;;  %2528 = vmatpush1.bf16.msra.mxu0 %v4397_v5  ;;  %p5275_p10 = por %p5274_p9, %p5273_p8 }
  0x5e   :  { %v4390_v10 = vcombine.high %v177_v6, %v181_v7  ;;  %v305_v11 = vld [vmem:[#allocation5 + $0x580] sm:$0xff]  ;;  %2568 = vmatprep.subr.bf16.mxu1 %v4526_v8  ;;  %v4389_v18 = vcombine.low %v177_v6, %v181_v7 }
  0x5f   :  { %v309_v12 = vld [vmem:[#allocation5 + $0x5a0] sm:$0xff]  ;;  %2569 = vmatpush1.bf16.msra.mxu1 %v4525_v9  ;;  %p5276_p11 = pnand %p5275_p10, %p5269_p7 }
  0x60   :  { %v169_v13 = vld [vmem:[#allocation5 + $0x140] sm:$0xff]  ;;  %v4518_v14 = vcombine.high %v305_v11, %v309_v12  ;;  %2529 = vmatprep.subr.bf16.mxu0 %v4390_v10  ;;  %v4517_v19 = vcombine.low %v305_v11, %v309_v12 }
  0x61   :  { %v173_v15 = vld [vmem:[#allocation5 + $0x160] sm:$0xff]  ;;  %2530 = vmatpush1.bf16.msra.mxu0 %v4389_v18 }
  0x62   :  { %v297_v16 = vld [vmem:[#allocation5 + $0x540] sm:$0xff]  ;;  %v4382_v20 = vcombine.high %v169_v13, %v173_v15  ;;  %2570 = vmatprep.subr.bf16.mxu1 %v4518_v14  ;;  %v4381_v26 = vcombine.low %v169_v13, %v173_v15 }
  0x63   :  { %v301_v17 = vld [vmem:[#allocation5 + $0x560] sm:$0xff]  ;;  %2571 = vmatpush1.bf16.msra.mxu1 %v4517_v19 }
  0x64   :  { %v4510_v21 = vcombine.high %v297_v16, %v301_v17  ;;  %v161_v22 = vld [vmem:[#allocation5 + $0x100] sm:$0xff]  ;;  %2531 = vmatprep.subr.bf16.mxu0 %v4382_v20  ;;  %v4509_v27 = vcombine.low %v297_v16, %v301_v17 }
  0x65   :  { %v165_v23 = vld [vmem:[#allocation5 + $0x120] sm:$0xff]  ;;  %2532 = vmatpush1.bf16.msra.mxu0 %v4381_v26 }
  0x66   :  { %v289_v24 = vld [vmem:[#allocation5 + $0x500] sm:$0xff]  ;;  %v4374_v28 = vcombine.high %v161_v22, %v165_v23  ;;  %2572 = vmatprep.subr.bf16.mxu1 %v4510_v21  ;;  %v4373_v34 = vcombine.low %v161_v22, %v165_v23 }
  0x67   :  { %v293_v25 = vld [vmem:[#allocation5 + $0x520] sm:$0xff]  ;;  %2573 = vmatpush1.bf16.msra.mxu1 %v4509_v27 }
  0x68   :  { %v4502_v29 = vcombine.high %v289_v24, %v293_v25  ;;  %v153_v30 = vld [vmem:[#allocation5 + $0xc0] sm:$0xff]  ;;  %2533 = vmatprep.subr.bf16.mxu0 %v4374_v28  ;;  %v4501_v35 = vcombine.low %v289_v24, %v293_v25 }
  0x69   :  { %v157_v31 = vld [vmem:[#allocation5 + $0xe0] sm:$0xff]  ;;  %2534 = vmatpush1.bf16.msra.mxu0 %v4373_v34 }
  0x6a   :  { %v281_v32 = vld [vmem:[#allocation5 + $0x4c0] sm:$0xff]  ;;  %v4366_v36 = vcombine.high %v153_v30, %v157_v31  ;;  %2574 = vmatprep.subr.bf16.mxu1 %v4502_v29  ;;  %v4365_v42 = vcombine.low %v153_v30, %v157_v31 }
  0x6b   :  { %v285_v33 = vld [vmem:[#allocation5 + $0x4e0] sm:$0xff]  ;;  %2575 = vmatpush1.bf16.msra.mxu1 %v4501_v35 }
  0x6c   :  { %v4494_v37 = vcombine.high %v281_v32, %v285_v33  ;;  %v145_v38 = vld [vmem:[#allocation5 + $0x80] sm:$0xff]  ;;  %2535 = vmatprep.subr.bf16.mxu0 %v4366_v36  ;;  %v4493_v43 = vcombine.low %v281_v32, %v285_v33 }
  0x6d   :  { %v149_v39 = vld [vmem:[#allocation5 + $0xa0] sm:$0xff]  ;;  %2536 = vmatpush1.bf16.msra.mxu0 %v4365_v42 }
  0x6e   :  { %v273_v40 = vld [vmem:[#allocation5 + $0x480] sm:$0xff]  ;;  %v4358_v44 = vcombine.high %v145_v38, %v149_v39  ;;  %2576 = vmatprep.subr.bf16.mxu1 %v4494_v37  ;;  %v4357_v50 = vcombine.low %v145_v38, %v149_v39 }
  0x6f   :  { %v277_v41 = vld [vmem:[#allocation5 + $0x4a0] sm:$0xff]  ;;  %2577 = vmatpush1.bf16.msra.mxu1 %v4493_v43 }
  0x70   :  { %v4486_v45 = vcombine.high %v273_v40, %v277_v41  ;;  %v137_v46 = vld [vmem:[#allocation5 + $0x40] sm:$0xff]  ;;  %2537 = vmatprep.subr.bf16.mxu0 %v4358_v44  ;;  %v4485_v51 = vcombine.low %v273_v40, %v277_v41 }
  0x71   :  { %v141_v47 = vld [vmem:[#allocation5 + $0x60] sm:$0xff]  ;;  %2538 = vmatpush1.bf16.msra.mxu0 %v4357_v50 }
  0x72   :  { %v265_v48 = vld [vmem:[#allocation5 + $0x440] sm:$0xff]  ;;  %v4350_v52 = vcombine.high %v137_v46, %v141_v47  ;;  %2578 = vmatprep.subr.bf16.mxu1 %v4486_v45  ;;  %v4349_v62 = vcombine.low %v137_v46, %v141_v47 }
  0x73   :  { %v269_v49 = vld [vmem:[#allocation5 + $0x460] sm:$0xff]  ;;  %2579 = vmatpush1.bf16.msra.mxu1 %v4485_v51 }
  0x74   :  { %v118_v54 = vld [vmem:[#allocation2 + $0x18] sm:$0xff]  ;;  %v4478_v55 = vcombine.high %v265_v48, %v269_v49  ;;  %2539 = vmatprep.subr.bf16.mxu0 %v4350_v52  ;;  %v4477_v63 = vcombine.low %v265_v48, %v269_v49 }
  0x75   :  { %v129_v56 = vld [vmem:[#allocation5] sm:$0xff]  ;;  %v5376_v59 = vpack.c.bf16 %v118_v54, %v118_v54  ;;  %2540 = vmatpush1.bf16.msra.mxu0 %v4349_v62 }
  0x76   :  { %v133_v57 = vld [vmem:[#allocation5 + $0x20] sm:$0xff]  ;;  %2580 = vmatprep.subr.bf16.mxu1 %v4478_v55 }
  0x77   :  { %v257_v60 = vld [vmem:[#allocation5 + $0x400] sm:$0xff]  ;;  %v4342_v0 = vcombine.high %v129_v56, %v133_v57  ;;  %2600 = vmatprep.mubr.bf16.mxu1 %v5376_v59  ;;  %v4341_v6 = vcombine.low %v129_v56, %v133_v57  ;;  %2581 = vmatpush1.bf16.msra.mxu1 %v4477_v63 }
  0x78   :  { %v261_v61 = vld [vmem:[#allocation5 + $0x420] sm:$0xff] }
  0x79   :  { %v4470_v1 = vcombine.high %v257_v60, %v261_v61  ;;  %v249_v2 = vld [vmem:[#allocation5 + $0x3c0] sm:$0xff]  ;;  %2541 = vmatprep.subr.bf16.mxu0 %v4342_v0  ;;  %v4469_v7 = vcombine.low %v257_v60, %v261_v61 }
  0x7a   :  { %v253_v3 = vld [vmem:[#allocation5 + $0x3e0] sm:$0xff]  ;;  %2542 = vmatpush1.bf16.msra.mxu0 %v4341_v6 }
  0x7b   :  { %v377_v4 = vld [vmem:[#allocation5 + $0x7c0] sm:$0xff]  ;;  %v4462_v8 = vcombine.high %v249_v2, %v253_v3  ;;  %2582 = vmatprep.subr.bf16.mxu1 %v4470_v1  ;;  %v4461_v14 = vcombine.low %v249_v2, %v253_v3 }
  0x7c   :  { %v381_v5 = vld [vmem:[#allocation5 + $0x7e0] sm:$0xff]  ;;  %2583 = vmatpush1.bf16.msra.mxu1 %v4469_v7 }
  0x7d   :  { %v4590_v9 = vcombine.high %v377_v4, %v381_v5  ;;  %v241_v10 = vld [vmem:[#allocation5 + $0x380] sm:$0xff]  ;;  %2543 = vmatprep.subr.bf16.mxu0 %v4462_v8  ;;  %v4589_v15 = vcombine.low %v377_v4, %v381_v5 }
  0x7e   :  { %v245_v11 = vld [vmem:[#allocation5 + $0x3a0] sm:$0xff]  ;;  %2544 = vmatpush2.bf16.msra.mxu0 %v4461_v14 }
  0x7f   :  { %v369_v12 = vld [vmem:[#allocation5 + $0x780] sm:$0xff]  ;;  %v4454_v16 = vcombine.high %v241_v10, %v245_v11  ;;  %2584 = vmatprep.subr.bf16.mxu1 %v4590_v9  ;;  %v4453_v22 = vcombine.low %v241_v10, %v245_v11  ;;  %v115_v9 = vld [vmem:[#allocation2] sm:$0xff]  ;;  %v117_v11 = vld [vmem:[#allocation2 + $0x10] sm:$0xff] }
  0x80   :  { %v373_v13 = vld [vmem:[#allocation5 + $0x7a0] sm:$0xff]  ;;  %2585 = vmatpush2.bf16.msra.mxu1 %v4589_v15 }
  0x81   :  { %v4582_v17 = vcombine.high %v369_v12, %v373_v13  ;;  %v233_v18 = vld [vmem:[#allocation5 + $0x340] sm:$0xff]  ;;  %2545 = vmatprep.subr.bf16.mxu0 %v4454_v16  ;;  %v4581_v23 = vcombine.low %v369_v12, %v373_v13  ;;  %v5380_v16 = vpack.c.bf16 %v115_v9, %v115_v9 }
  0x82   :  { %v237_v19 = vld [vmem:[#allocation5 + $0x360] sm:$0xff]  ;;  %2546 = vmatpush2.bf16.msra.mxu0 %v4453_v22 }
  0x83   :  { %v361_v20 = vld [vmem:[#allocation5 + $0x740] sm:$0xff]  ;;  %v4446_v24 = vcombine.high %v233_v18, %v237_v19  ;;  %2586 = vmatprep.subr.bf16.mxu1 %v4582_v17  ;;  %v4445_v30 = vcombine.low %v233_v18, %v237_v19  ;;  %v186_v17 = vld [vmem:[#allocation5 + $0x1c8] sm:$0xff]  ;;  %v5382_v19 = vpack.c.bf16 %v117_v11, %v117_v11 }
  0x84   :  { %v365_v21 = vld [vmem:[#allocation5 + $0x760] sm:$0xff]  ;;  %2587 = vmatpush2.bf16.msra.mxu1 %v4581_v23  ;;  %v190_v18 = vld [vmem:[#allocation5 + $0x1e8] sm:$0xff] }
  0x85   :  { %v4574_v25 = vcombine.high %v361_v20, %v365_v21  ;;  %v225_v26 = vld [vmem:[#allocation5 + $0x300] sm:$0xff]  ;;  %2547 = vmatprep.subr.bf16.mxu0 %v4446_v24  ;;  %v4573_v31 = vcombine.low %v361_v20, %v365_v21  ;;  %v120_v21 = vld [vmem:[#allocation2 + $0x28] sm:$0xff]  ;;  %v4400_v24 = vcombine.high %v186_v17, %v190_v18 }
  0x86   :  { %v229_v27 = vld [vmem:[#allocation5 + $0x320] sm:$0xff]  ;;  %2548 = vmatpush2.bf16.msra.mxu0 %v4445_v30 }
  0x87   :  { %v353_v28 = vld [vmem:[#allocation5 + $0x700] sm:$0xff]  ;;  %v4438_v32 = vcombine.high %v225_v26, %v229_v27  ;;  %2588 = vmatprep.subr.bf16.mxu1 %v4574_v25  ;;  %v4437_v38 = vcombine.low %v225_v26, %v229_v27  ;;  %v121_v27 = vld [vmem:[#allocation2 + $0x30] sm:$0xff] }
  0x88   :  { %v357_v29 = vld [vmem:[#allocation5 + $0x720] sm:$0xff]  ;;  %2589 = vmatpush2.bf16.msra.mxu1 %v4573_v31  ;;  %v178_v31 = vld [vmem:[#allocation5 + $0x188] sm:$0xff] }
  0x89   :  { %v4566_v33 = vcombine.high %v353_v28, %v357_v29  ;;  %v217_v34 = vld [vmem:[#allocation5 + $0x2c0] sm:$0xff]  ;;  %2549 = vmatprep.subr.bf16.mxu0 %v4438_v32  ;;  %v4565_v39 = vcombine.low %v353_v28, %v357_v29  ;;  %v5385_v28 = vpack.c.bf16 %v120_v21, %v120_v21  ;;  %v182_v32 = vld [vmem:[#allocation5 + $0x1a8] sm:$0xff] }
  0x8a   :  { %v221_v35 = vld [vmem:[#allocation5 + $0x2e0] sm:$0xff]  ;;  %2550 = vmatpush2.bf16.msra.mxu0 %v4437_v38  ;;  %v4399_v38 = vcombine.low %v186_v17, %v190_v18 }
  0x8b   :  { %v345_v36 = vld [vmem:[#allocation5 + $0x6c0] sm:$0xff]  ;;  %v4430_v40 = vcombine.high %v217_v34, %v221_v35  ;;  %2590 = vmatprep.subr.bf16.mxu1 %v4566_v33  ;;  %v4429_v46 = vcombine.low %v217_v34, %v221_v35  ;;  %v5311_v33 = vmov 0  }
  0x8c   :  { %v349_v37 = vld [vmem:[#allocation5 + $0x6e0] sm:$0xff]  ;;  %2591 = vmatpush2.bf16.msra.mxu1 %v4565_v39 }
  0x8d   :  { %v4558_v41 = vcombine.high %v345_v36, %v349_v37  ;;  %v209_v42 = vld [vmem:[#allocation5 + $0x280] sm:$0xff]  ;;  %2551 = vmatprep.subr.bf16.mxu0 %v4430_v40  ;;  %v4557_v47 = vcombine.low %v345_v36, %v349_v37  ;;  %v5390_v37 = vpack.c.bf16 %v121_v27, %v121_v27  ;;  %v170_v40 = vld [vmem:[#allocation5 + $0x148] sm:$0xff] }
  0x8e   :  { %v213_v43 = vld [vmem:[#allocation5 + $0x2a0] sm:$0xff]  ;;  %2552 = vmatpush2.bf16.msra.mxu0 %v4429_v46  ;;  %v4391_v46 = vcombine.low %v178_v31, %v182_v32 }
  0x8f   :  { %v337_v44 = vld [vmem:[#allocation5 + $0x680] sm:$0xff]  ;;  %v4422_v48 = vcombine.high %v209_v42, %v213_v43  ;;  %2592 = vmatprep.subr.bf16.mxu1 %v4558_v41  ;;  %v4421_v54 = vcombine.low %v209_v42, %v213_v43  ;;  %v174_v41 = vld [vmem:[#allocation5 + $0x168] sm:$0xff]  ;;  %v4392_v42 = vcombine.high %v178_v31, %v182_v32 }
  0x90   :  { %v341_v45 = vld [vmem:[#allocation5 + $0x6a0] sm:$0xff]  ;;  %2593 = vmatpush2.bf16.msra.mxu1 %v4557_v47  ;;  %v250_v32 = vld [vmem:[#allocation5 + $0x3c8] sm:$0xff] }
  0x91   :  { %v4550_v49 = vcombine.high %v337_v44, %v341_v45  ;;  %v201_v50 = vld [vmem:[#allocation5 + $0x240] sm:$0xff]  ;;  %2553 = vmatprep.subr.bf16.mxu0 %v4422_v48  ;;  %v4549_v55 = vcombine.low %v337_v44, %v341_v45  ;;  %v162_v48 = vld [vmem:[#allocation5 + $0x108] sm:$0xff] }
  0x92   :  { %v205_v51 = vld [vmem:[#allocation5 + $0x260] sm:$0xff]  ;;  %2554 = vmatpush2.bf16.msra.mxu0 %v4421_v54 }
  0x93   :  { %v329_v52 = vld [vmem:[#allocation5 + $0x640] sm:$0xff]  ;;  %v4414_v56 = vcombine.high %v201_v50, %v205_v51  ;;  %2594 = vmatprep.subr.bf16.mxu1 %v4550_v49  ;;  %v4413_v0 = vcombine.low %v201_v50, %v205_v51  ;;  %v166_v49 = vld [vmem:[#allocation5 + $0x128] sm:$0xff] }
  0x94   :  { %v333_v53 = vld [vmem:[#allocation5 + $0x660] sm:$0xff]  ;;  %2595 = vmatpush2.bf16.msra.mxu1 %v4549_v55 }
  0x95   :  { %v4542_v57 = vcombine.high %v329_v52, %v333_v53  ;;  %v193_v60 = vld [vmem:[#allocation5 + $0x200] sm:$0xff]  ;;  %2555 = vmatprep.subr.bf16.mxu0 %v4414_v56  ;;  %v4541_v1 = vcombine.low %v329_v52, %v333_v53  ;;  %v4384_v52 = vcombine.high %v170_v40, %v174_v41  ;;  %v4383_v56 = vcombine.low %v170_v40, %v174_v41 }
  0x96   :  { %v197_v61 = vld [vmem:[#allocation5 + $0x220] sm:$0xff]  ;;  %2556 = vmatpush2.bf16.msra.mxu0 %v4413_v0  ;;  %v4375_v0 = vcombine.low %v162_v48, %v166_v49 }
  0x97   :  { %v321_v62 = vld [vmem:[#allocation5 + $0x600] sm:$0xff]  ;;  %v4406_v2 = vcombine.high %v193_v60, %v197_v61  ;;  %2596 = vmatprep.subr.bf16.mxu1 %v4542_v57  ;;  %v4405_v8 = vcombine.low %v193_v60, %v197_v61  ;;  %v4376_v60 = vcombine.high %v162_v48, %v166_v49  ;;  %v154_v61 = vld [vmem:[#allocation5 + $0xc8] sm:$0xff] }
  0x98   :  { %v325_v63 = vld [vmem:[#allocation5 + $0x620] sm:$0xff]  ;;  %2597 = vmatpush2.bf16.msra.mxu1 %v4541_v1 }
  0x99   :  { %v4534_v3 = vcombine.high %v321_v62, %v325_v63  ;;  %v441_v4 = vld [vmem:[#allocation5 + $0x9c0] sm:$0xff]  ;;  %2557 = vmatprep.subr.bf16.mxu0 %v4406_v2  ;;  %v4533_v10 = vcombine.low %v321_v62, %v325_v63  ;;  %v158_v62 = vld [vmem:[#allocation5 + $0xe8] sm:$0xff] }
  0x9a   :  { %v445_v5 = vld [vmem:[#allocation5 + $0x9e0] sm:$0xff]  ;;  %2558 = vmatpush2.bf16.msra.mxu0 %v4405_v8  ;;  %v4367_v8 = vcombine.low %v154_v61, %v158_v62 }
  0x9b   :  { %v513_v6 = vld [vmem:[#allocation5 + $0xc00] sm:$0xff]  ;;  %v4654_v12 = vcombine.high %v441_v4, %v445_v5  ;;  %2598 = vmatprep.subr.bf16.mxu1 %v4534_v3  ;;  %v4653_v20 = vcombine.low %v441_v4, %v445_v5  ;;  %v4368_v4 = vcombine.high %v154_v61, %v158_v62  ;;  %v146_v5 = vld [vmem:[#allocation5 + $0x88] sm:$0xff] }
  0x9c   :  { %v517_v7 = vld [vmem:[#allocation5 + $0xc20] sm:$0xff]  ;;  %2599 = vmatpush2.bf16.msra.mxu1 %v4533_v10  ;;  %v230_v61 = vld [vmem:[#allocation5 + $0x328] sm:$0xff] }
  0x9d   :  { %v4726_v13 = vcombine.high %v513_v6, %v517_v7  ;;  %v433_v14 = vld [vmem:[#allocation5 + $0x980] sm:$0xff]  ;;  %2609 = vmatprep.subr.bf16.mxu0 %v4654_v12  ;;  %v4725_v22 = vcombine.low %v513_v6, %v517_v7  ;;  %2560 = vmatmul.mubr.bf16.vlgmr.msra.gmra.mxu0 %v5380_v16  ;;  %v150_v6 = vld [vmem:[#allocation5 + $0xa8] sm:$0xff] }
  0x9e   :  { %v437_v15 = vld [vmem:[#allocation5 + $0x9a0] sm:$0xff]  ;;  %2610 = vmatpush1.bf16.msra.mxu0 %v4653_v20  ;;  %2641 = vmatprep.mubr.bf16.mxu0 %v5385_v28  ;;  %v4360_v12 = vcombine.high %v146_v5, %v150_v6  ;;  %v4359_v17 = vcombine.low %v146_v5, %v150_v6  ;;  %v222_v5 = vld [vmem:[#allocation5 + $0x2e8] sm:$0xff] }
  0x9f   :  { %v4646_v23 = vcombine.high %v433_v14, %v437_v15  ;;  %2664 = vmatprep.subr.bf16.mxu1 %v4726_v13  ;;  %v425_v25 = vld [vmem:[#allocation5 + $0x940] sm:$0xff]  ;;  %2601 = vmatmul.mubr.bf16.vlgmr.msra.gmra.mxu1 %v5382_v19  ;;  %v4645_v29 = vcombine.low %v433_v14, %v437_v15  ;;  %v138_v13 = vld [vmem:[#allocation5 + $0x48] sm:$0xff] }
  0xa0   :  { %v429_v26 = vld [vmem:[#allocation5 + $0x960] sm:$0xff]  ;;  %2665 = vmatpush1.bf16.msra.mxu1 %v4725_v22  ;;  %2682 = vmatprep.mubr.bf16.mxu1 %v5311_v33  ;;  %v142_v14 = vld [vmem:[#allocation5 + $0x68] sm:$0xff] }
  0xa1   :  { %2611 = vmatprep.subr.bf16.mxu0 %v4646_v23  ;;  %v4638_v30 = vcombine.high %v425_v25, %v429_v26  ;;  %2691 = vmatprep.subr.bf16.mxu1 %v4400_v24  ;;  %v417_v34 = vld [vmem:[#allocation5 + $0x900] sm:$0xff]  ;;  %v4637_v36 = vcombine.low %v425_v25, %v429_v26  ;;  %v4352_v22 = vcombine.high %v138_v13, %v142_v14  ;;  %v130_v23 = vld [vmem:[#allocation5 + $0x8] sm:$0xff] }
  0xa2   :  { %v421_v35 = vld [vmem:[#allocation5 + $0x920] sm:$0xff]  ;;  %2612 = vmatpush1.bf16.msra.mxu0 %v4645_v29  ;;  %v134_v24 = vld [vmem:[#allocation5 + $0x28] sm:$0xff]  ;;  %v4351_v26 = vcombine.low %v138_v13, %v142_v14 }
  0xa3   :  { %2613 = vmatprep.subr.bf16.mxu0 %v4638_v30  ;;  %v4630_v39 = vcombine.high %v417_v34, %v421_v35  ;;  %v409_v43 = vld [vmem:[#allocation5 + $0x8c0] sm:$0xff]  ;;  %v4629_v45 = vcombine.low %v417_v34, %v421_v35  ;;  %v4344_v31 = vcombine.high %v130_v23, %v134_v24  ;;  %v254_v34 = vld [vmem:[#allocation5 + $0x3e8] sm:$0xff] }
  0xa4   :  { %v413_v44 = vld [vmem:[#allocation5 + $0x8e0] sm:$0xff]  ;;  %v4464_v41 = vcombine.high %v250_v32, %v254_v34  ;;  %v214_v13 = vld [vmem:[#allocation5 + $0x2a8] sm:$0xff] }
  0xa5   :  { %v4622_v47 = vcombine.high %v409_v43, %v413_v44  ;;  %v401_v50 = vld [vmem:[#allocation5 + $0x880] sm:$0xff]  ;;  %v4621_v53 = vcombine.low %v409_v43, %v413_v44  ;;  %v246_v43 = vld [vmem:[#allocation5 + $0x3a8] sm:$0xff] }
  0xa6   :  { %2614 = vmatpush1.bf16.msra.mxu0 %v4637_v36  ;;  %v405_v51 = vld [vmem:[#allocation5 + $0x8a0] sm:$0xff]  ;;  %v4343_v36 = vcombine.low %v130_v23, %v134_v24  ;;  %v206_v23 = vld [vmem:[#allocation5 + $0x268] sm:$0xff] }
  0xa7   :  { %4733 = vmatmul.mubr.msk.bf16.vlgmr.msra.gmra.mxu1 %vm2523_vm0, %v5390_v37  ;;  %2615 = vmatprep.subr.bf16.mxu0 %v4630_v39  ;;  %v393_v54 = vld [vmem:[#allocation5 + $0x840] sm:$0xff]  ;;  %v4614_v57 = vcombine.high %v401_v50, %v405_v51  ;;  %v4613_v63 = vcombine.low %v401_v50, %v405_v51  ;;  %v234_v50 = vld [vmem:[#allocation5 + $0x348] sm:$0xff] }
  0xa8   :  { %2692 = vmatpush1.bf16.msra.mxu1 %v4399_v38  ;;  %2723 = vmatprep.mubr.bf16.mxu1 %v5374_v58  ;;  %v397_v55 = vld [vmem:[#allocation5 + $0x860] sm:$0xff]  ;;  %v238_v51 = vld [vmem:[#allocation5 + $0x368] sm:$0xff] }
  0xa9   :  { %2693 = vmatprep.subr.bf16.mxu1 %v4392_v42  ;;  %v4606_v1 = vcombine.high %v393_v54, %v397_v55  ;;  %v385_v2 = vld [vmem:[#allocation5 + $0x800] sm:$0xff]  ;;  %v4605_v7 = vcombine.low %v393_v54, %v397_v55  ;;  %v242_v42 = vld [vmem:[#allocation5 + $0x388] sm:$0xff] }
  0xaa   :  { %2616 = vmatpush1.bf16.msra.mxu0 %v4629_v45  ;;  %v389_v3 = vld [vmem:[#allocation5 + $0x820] sm:$0xff]  ;;  %v4463_v45 = vcombine.low %v250_v32, %v254_v34  ;;  %v4456_v49 = vcombine.high %v242_v42, %v246_v43  ;;  %v119_v24 = vld [vmem:[#allocation2 + $0x20] sm:$0xff] }
  0xab   :  { %2617 = vmatprep.subr.bf16.mxu0 %v4622_v47  ;;  %v4598_v9 = vcombine.high %v385_v2, %v389_v3  ;;  %v505_v10 = vld [vmem:[#allocation5 + $0xbc0] sm:$0xff]  ;;  %v4597_v15 = vcombine.low %v385_v2, %v389_v3  ;;  %v5395_v32 = vpack.c.bf16 %v119_v24, %v119_v24  ;;  %v194_v34 = vld [vmem:[#allocation5 + $0x208] sm:$0xff] }
  0xac   :  { %2694 = vmatpush1.bf16.msra.mxu1 %v4391_v46  ;;  %v509_v11 = vld [vmem:[#allocation5 + $0xbe0] sm:$0xff]  ;;  %v406_v24 = vld [vmem:[#allocation5 + $0x8a8] sm:$0xff] }
  0xad   :  { %2695 = vmatprep.subr.bf16.mxu1 %v4384_v52  ;;  %v4718_v18 = vcombine.high %v505_v10, %v509_v11  ;;  %v497_v20 = vld [vmem:[#allocation5 + $0xb80] sm:$0xff]  ;;  %v4717_v25 = vcombine.low %v505_v10, %v509_v11 }
  0xae   :  { %2618 = vmatpush1.bf16.msra.mxu0 %v4621_v53  ;;  %v501_v21 = vld [vmem:[#allocation5 + $0xba0] sm:$0xff]  ;;  %v4455_v53 = vcombine.low %v242_v42, %v246_v43  ;;  %v442_v43 = vld [vmem:[#allocation5 + $0x9c8] sm:$0xff] }
  0xaf   :  { %2619 = vmatprep.subr.bf16.mxu0 %v4614_v57  ;;  %v4710_v27 = vcombine.high %v497_v20, %v501_v21  ;;  %v489_v29 = vld [vmem:[#allocation5 + $0xb40] sm:$0xff]  ;;  %v4709_v35 = vcombine.low %v497_v20, %v501_v21  ;;  %v4448_v57 = vcombine.high %v234_v50, %v238_v51  ;;  %v314_v20 = vld [vmem:[#allocation5 + $0x5c8] sm:$0xff] }
  0xb0   :  { %2696 = vmatpush1.bf16.msra.mxu1 %v4383_v56  ;;  %v493_v30 = vld [vmem:[#allocation5 + $0xb60] sm:$0xff]  ;;  %v318_v21 = vld [vmem:[#allocation5 + $0x5e8] sm:$0xff] }
  0xb1   :  { %2697 = vmatprep.subr.bf16.mxu1 %v4376_v60  ;;  %v4702_v38 = vcombine.high %v489_v29, %v493_v30  ;;  %v481_v39 = vld [vmem:[#allocation5 + $0xb00] sm:$0xff]  ;;  %v4701_v44 = vcombine.low %v489_v29, %v493_v30  ;;  %v226_v60 = vld [vmem:[#allocation5 + $0x308] sm:$0xff] }
  0xb2   :  { %2620 = vmatpush1.bf16.msra.mxu0 %v4613_v63  ;;  %v485_v40 = vld [vmem:[#allocation5 + $0xb20] sm:$0xff]  ;;  %v4447_v63 = vcombine.low %v234_v50, %v238_v51  ;;  %v4440_v3 = vcombine.high %v226_v60, %v230_v61  ;;  %v306_v29 = vld [vmem:[#allocation5 + $0x588] sm:$0xff] }
  0xb3   :  { %2621 = vmatprep.subr.bf16.mxu0 %v4606_v1  ;;  %v4694_v46 = vcombine.high %v481_v39, %v485_v40  ;;  %v473_v47 = vld [vmem:[#allocation5 + $0xac0] sm:$0xff]  ;;  %v4693_v52 = vcombine.low %v481_v39, %v485_v40  ;;  %v310_v30 = vld [vmem:[#allocation5 + $0x5a8] sm:$0xff] }
  0xb4   :  { %2698 = vmatpush1.bf16.msra.mxu1 %v4375_v0  ;;  %v477_v48 = vld [vmem:[#allocation5 + $0xae0] sm:$0xff]  ;;  %v4520_v39 = vcombine.high %v306_v29, %v310_v30  ;;  %v298_v40 = vld [vmem:[#allocation5 + $0x548] sm:$0xff] }
  0xb5   :  { %2699 = vmatprep.subr.bf16.mxu1 %v4368_v4  ;;  %v4686_v54 = vcombine.high %v473_v47, %v477_v48  ;;  %v465_v55 = vld [vmem:[#allocation5 + $0xa80] sm:$0xff]  ;;  %v4685_v62 = vcombine.low %v473_v47, %v477_v48  ;;  %v218_v4 = vld [vmem:[#allocation5 + $0x2c8] sm:$0xff] }
  0xb6   :  { %2622 = vmatpush1.bf16.msra.mxu0 %v4605_v7  ;;  %v469_v56 = vld [vmem:[#allocation5 + $0xaa0] sm:$0xff]  ;;  %v4439_v7 = vcombine.low %v226_v60, %v230_v61  ;;  %v4432_v11 = vcombine.high %v218_v4, %v222_v5  ;;  %v290_v48 = vld [vmem:[#allocation5 + $0x508] sm:$0xff] }
  0xb7   :  { %2623 = vmatprep.subr.bf16.mxu0 %v4598_v9  ;;  %v4678_v0 = vcombine.high %v465_v55, %v469_v56  ;;  %v457_v1 = vld [vmem:[#allocation5 + $0xa40] sm:$0xff]  ;;  %v4677_v6 = vcombine.low %v465_v55, %v469_v56  ;;  %v434_v51 = vld [vmem:[#allocation5 + $0x988] sm:$0xff] }
  0xb8   :  { %2700 = vmatpush1.bf16.msra.mxu1 %v4367_v8  ;;  %v461_v2 = vld [vmem:[#allocation5 + $0xa60] sm:$0xff]  ;;  %v282_v56 = vld [vmem:[#allocation5 + $0x4c8] sm:$0xff] }
  0xb9   :  { %2701 = vmatprep.subr.bf16.mxu1 %v4360_v12  ;;  %v4670_v8 = vcombine.high %v457_v1, %v461_v2  ;;  %v449_v9 = vld [vmem:[#allocation5 + $0xa00] sm:$0xff]  ;;  %v210_v12 = vld [vmem:[#allocation5 + $0x288] sm:$0xff]  ;;  %v4669_v14 = vcombine.low %v457_v1, %v461_v2 }
  0xba   :  { %2624 = vmatpush1.bf16.msra.mxu0 %v4597_v15  ;;  %v453_v10 = vld [vmem:[#allocation5 + $0xa20] sm:$0xff]  ;;  %v4431_v15 = vcombine.low %v218_v4, %v222_v5  ;;  %v426_v61 = vld [vmem:[#allocation5 + $0x948] sm:$0xff] }
  0xbb   :  { %2625 = vmatprep.subr.bf16.mxu0 %v4718_v18  ;;  %v202_v18 = vld [vmem:[#allocation5 + $0x248] sm:$0xff] }
  0xbc   :  { %2702 = vmatpush1.bf16.msra.mxu1 %v4359_v17  ;;  %v4662_v17 = vcombine.high %v449_v9, %v453_v10  ;;  %v274_v2 = vld [vmem:[#allocation5 + $0x488] sm:$0xff] }
  0xbd   :  { %2703 = vmatprep.subr.bf16.mxu1 %v4352_v22  ;;  %v4424_v22 = vcombine.high %v210_v12, %v214_v13  ;;  %v418_v5 = vld [vmem:[#allocation5 + $0x908] sm:$0xff] }
  0xbe   :  { %2626 = vmatpush2.bf16.msra.mxu0 %v4717_v25  ;;  %v4661_v25 = vcombine.low %v449_v9, %v453_v10 }
  0xbf   :  { %2627 = vmatprep.subr.bf16.mxu0 %v4710_v27  ;;  %v4528_v27 = vcombine.high %v314_v20, %v318_v21 }
  0xc0   :  { %2704 = vmatpush1.bf16.msra.mxu1 %v4351_v26  ;;  %v4423_v26 = vcombine.low %v210_v12, %v214_v13  ;;  %v270_v12 = vld [vmem:[#allocation5 + $0x468] sm:$0xff] }
  0xc1   :  { %2705 = vmatprep.subr.bf16.mxu1 %v4344_v31  ;;  %v4416_v31 = vcombine.high %v202_v18, %v206_v23  ;;  %v410_v13 = vld [vmem:[#allocation5 + $0x8c8] sm:$0xff] }
  0xc2   :  { %2628 = vmatpush2.bf16.msra.mxu0 %v4709_v35  ;;  %v198_v35 = vld [vmem:[#allocation5 + $0x228] sm:$0xff] }
  0xc3   :  { %2629 = vmatprep.subr.bf16.mxu0 %v4702_v38  ;;  %v4415_v38 = vcombine.low %v202_v18, %v206_v23  ;;  %v4408_v42 = vcombine.high %v194_v34, %v198_v35  ;;  %v402_v23 = vld [vmem:[#allocation5 + $0x888] sm:$0xff] }
  0xc4   :  { %2706 = vmatpush1.bf16.msra.mxu1 %v4343_v36  ;;  %v4527_v36 = vcombine.low %v314_v20, %v318_v21  ;;  %v258_v21 = vld [vmem:[#allocation5 + $0x408] sm:$0xff] }
  0xc5   :  { %2707 = vmatprep.subr.bf16.mxu1 %v4464_v41  ;;  %v302_v41 = vld [vmem:[#allocation5 + $0x568] sm:$0xff] }
  0xc6   :  { %2630 = vmatpush2.bf16.msra.mxu0 %v4701_v44  ;;  %v446_v44 = vld [vmem:[#allocation5 + $0x9e8] sm:$0xff]  ;;  %v4512_v47 = vcombine.high %v298_v40, %v302_v41 }
  0xc7   :  { %2631 = vmatprep.subr.bf16.mxu0 %v4694_v46  ;;  %v4407_v46 = vcombine.low %v194_v34, %v198_v35  ;;  %v4656_v50 = vcombine.high %v442_v43, %v446_v44  ;;  %v394_v34 = vld [vmem:[#allocation5 + $0x848] sm:$0xff] }
  0xc8   :  { %2708 = vmatpush2.bf16.msra.mxu1 %v4463_v45  ;;  %v4519_v45 = vcombine.low %v306_v29, %v310_v30  ;;  %v4616_v29 = vcombine.high %v402_v23, %v406_v24  ;;  %v378_v30 = vld [vmem:[#allocation5 + $0x7c8] sm:$0xff] }
  0xc9   :  { %2709 = vmatprep.subr.bf16.mxu1 %v4456_v49  ;;  %v294_v49 = vld [vmem:[#allocation5 + $0x528] sm:$0xff] }
  0xca   :  { %2632 = vmatpush2.bf16.msra.mxu0 %v4693_v52  ;;  %v438_v52 = vld [vmem:[#allocation5 + $0x9a8] sm:$0xff]  ;;  %v4504_v55 = vcombine.high %v290_v48, %v294_v49 }
  0xcb   :  { %2633 = vmatprep.subr.bf16.mxu0 %v4686_v54  ;;  %v4655_v54 = vcombine.low %v442_v43, %v446_v44  ;;  %v4648_v60 = vcombine.high %v434_v51, %v438_v52  ;;  %v398_v35 = vld [vmem:[#allocation5 + $0x868] sm:$0xff] }
  0xcc   :  { %2710 = vmatpush2.bf16.msra.mxu1 %v4455_v53  ;;  %v4511_v53 = vcombine.low %v298_v40, %v302_v41  ;;  %v4608_v40 = vcombine.high %v394_v34, %v398_v35  ;;  %v370_v41 = vld [vmem:[#allocation5 + $0x788] sm:$0xff] }
  0xcd   :  { %2711 = vmatprep.subr.bf16.mxu1 %v4448_v57  ;;  %v286_v57 = vld [vmem:[#allocation5 + $0x4e8] sm:$0xff] }
  0xce   :  { %2634 = vmatpush2.bf16.msra.mxu0 %v4685_v62  ;;  %v430_v62 = vld [vmem:[#allocation5 + $0x968] sm:$0xff]  ;;  %v4496_v1 = vcombine.high %v282_v56, %v286_v57 }
  0xcf   :  { %2635 = vmatprep.subr.bf16.mxu0 %v4678_v0  ;;  %v4647_v0 = vcombine.low %v434_v51, %v438_v52  ;;  %v4640_v4 = vcombine.high %v426_v61, %v430_v62  ;;  %v386_v43 = vld [vmem:[#allocation5 + $0x808] sm:$0xff] }
  0xd0   :  { %2712 = vmatpush2.bf16.msra.mxu1 %v4447_v63  ;;  %v4503_v63 = vcombine.low %v290_v48, %v294_v49  ;;  %v390_v44 = vld [vmem:[#allocation5 + $0x828] sm:$0xff] }
  0xd1   :  { %2713 = vmatprep.subr.bf16.mxu1 %v4440_v3  ;;  %v278_v3 = vld [vmem:[#allocation5 + $0x4a8] sm:$0xff]  ;;  %v4600_v48 = vcombine.high %v386_v43, %v390_v44 }
  0xd2   :  { %2636 = vmatpush2.bf16.msra.mxu0 %v4677_v6  ;;  %v422_v6 = vld [vmem:[#allocation5 + $0x928] sm:$0xff]  ;;  %v4488_v9 = vcombine.high %v274_v2, %v278_v3 }
  0xd3   :  { %2637 = vmatprep.subr.bf16.mxu0 %v4670_v8  ;;  %v4639_v8 = vcombine.low %v426_v61, %v430_v62  ;;  %v4632_v10 = vcombine.high %v418_v5, %v422_v6  ;;  %v362_v49 = vld [vmem:[#allocation5 + $0x748] sm:$0xff] }
  0xd4   :  { %2714 = vmatpush2.bf16.msra.mxu1 %v4439_v7  ;;  %v4495_v7 = vcombine.low %v282_v56, %v286_v57  ;;  %v506_v51 = vld [vmem:[#allocation5 + $0xbc8] sm:$0xff] }
  0xd5   :  { %2715 = vmatprep.subr.bf16.mxu1 %v4432_v11  ;;  %v266_v11 = vld [vmem:[#allocation5 + $0x448] sm:$0xff] }
  0xd6   :  { %2638 = vmatpush2.bf16.msra.mxu0 %v4669_v14  ;;  %v414_v14 = vld [vmem:[#allocation5 + $0x8e8] sm:$0xff]  ;;  %v4480_v18 = vcombine.high %v266_v11, %v270_v12 }
  0xd7   :  { %2639 = vmatprep.subr.bf16.mxu0 %v4662_v17  ;;  %v4631_v17 = vcombine.low %v418_v5, %v422_v6  ;;  %v4624_v20 = vcombine.high %v410_v13, %v414_v14  ;;  %v510_v52 = vld [vmem:[#allocation5 + $0xbe8] sm:$0xff] }
  0xd8   :  { %2716 = vmatpush2.bf16.msra.mxu1 %v4431_v15  ;;  %v4487_v15 = vcombine.low %v274_v2, %v278_v3  ;;  %v4720_v56 = vcombine.high %v506_v51, %v510_v52  ;;  %v354_v57 = vld [vmem:[#allocation5 + $0x708] sm:$0xff] }
  0xd9   :  { %2717 = vmatprep.subr.bf16.mxu1 %v4424_v22  ;;  %v262_v22 = vld [vmem:[#allocation5 + $0x428] sm:$0xff] }
  0xda   :  { %2640 = vmatpush2.bf16.msra.mxu0 %v4661_v25  ;;  %v4479_v25 = vcombine.low %v266_v11, %v270_v12  ;;  %v498_v61 = vld [vmem:[#allocation5 + $0xb88] sm:$0xff] }
  0xdb   :  { %2732 = vmatprep.subr.bf16.mxu0 %v4528_v27  ;;  %v4472_v27 = vcombine.high %v258_v21, %v262_v22  ;;  %v502_v62 = vld [vmem:[#allocation5 + $0xba8] sm:$0xff] }
  0xdc   :  { %2718 = vmatpush2.bf16.msra.mxu1 %v4423_v26  ;;  %v4623_v26 = vcombine.low %v410_v13, %v414_v14  ;;  %v4712_v2 = vcombine.high %v498_v61, %v502_v62  ;;  %v346_v3 = vld [vmem:[#allocation5 + $0x6c8] sm:$0xff] }
  0xdd   :  { %2719 = vmatprep.subr.bf16.mxu1 %v4416_v31  ;;  %2642 = vmatmul.mubr.bf16.vlgmr.msra.gmra.mxu0 %v5395_v32  ;;  %v382_v31 = vld [vmem:[#allocation5 + $0x7e8] sm:$0xff] }
  0xde   :  { %2733 = vmatpush1.bf16.msra.mxu0 %v4527_v36  ;;  %2764 = vmatprep.mubr.bf16.mxu0 %v5376_v59  ;;  %v4471_v36 = vcombine.low %v258_v21, %v262_v22  ;;  %v490_v5 = vld [vmem:[#allocation5 + $0xb48] sm:$0xff] }
  0xdf   :  { %2734 = vmatprep.subr.bf16.mxu0 %v4520_v39  ;;  %v4592_v39 = vcombine.high %v378_v30, %v382_v31  ;;  %v494_v6 = vld [vmem:[#allocation5 + $0xb68] sm:$0xff] }
  0xe0   :  { %2720 = vmatpush2.bf16.msra.mxu1 %v4415_v38  ;;  %v4615_v38 = vcombine.low %v402_v23, %v406_v24  ;;  %v338_v11 = vld [vmem:[#allocation5 + $0x688] sm:$0xff] }
  0xe1   :  { %2721 = vmatprep.subr.bf16.mxu1 %v4408_v42  ;;  %v374_v42 = vld [vmem:[#allocation5 + $0x7a8] sm:$0xff] }
  0xe2   :  { %2735 = vmatpush1.bf16.msra.mxu0 %v4519_v45  ;;  %v4591_v45 = vcombine.low %v378_v30, %v382_v31  ;;  %v342_v12 = vld [vmem:[#allocation5 + $0x6a8] sm:$0xff] }
  0xe3   :  { %2736 = vmatprep.subr.bf16.mxu0 %v4512_v47  ;;  %v4584_v47 = vcombine.high %v370_v41, %v374_v42  ;;  %v482_v13 = vld [vmem:[#allocation5 + $0xb08] sm:$0xff] }
  0xe4   :  { %2722 = vmatpush2.bf16.msra.mxu1 %v4407_v46  ;;  %v4607_v46 = vcombine.low %v394_v34, %v398_v35  ;;  %v486_v14 = vld [vmem:[#allocation5 + $0xb28] sm:$0xff] }
  0xe5   :  { %2773 = vmatprep.subr.bf16.mxu1 %v4656_v50  ;;  %v366_v50 = vld [vmem:[#allocation5 + $0x768] sm:$0xff] }
  0xe6   :  { %2737 = vmatpush1.bf16.msra.mxu0 %v4511_v53  ;;  %v4583_v53 = vcombine.low %v370_v41, %v374_v42  ;;  %v330_v21 = vld [vmem:[#allocation5 + $0x648] sm:$0xff]  ;;  %v187_v41 = vld [vmem:[#allocation5 + $0x1d0] sm:$0xff] }
  0xe7   :  { %2724 = vmatmul.mubr.bf16.vlgmr.msra.gmra.mxu1 %v5380_v16  ;;  %2738 = vmatprep.subr.bf16.mxu0 %v4504_v55  ;;  %v4576_v55 = vcombine.high %v362_v49, %v366_v50  ;;  %v334_v22 = vld [vmem:[#allocation5 + $0x668] sm:$0xff]  ;;  %v191_v42 = vld [vmem:[#allocation5 + $0x1f0] sm:$0xff] }
  0xe8   :  { %2774 = vmatpush1.bf16.msra.mxu1 %v4655_v54  ;;  %2805 = vmatprep.mubr.bf16.mxu1 %v5385_v28  ;;  %v4599_v54 = vcombine.low %v386_v43, %v390_v44  ;;  %v474_v23 = vld [vmem:[#allocation5 + $0xac8] sm:$0xff] }
  0xe9   :  { %2775 = vmatprep.subr.bf16.mxu1 %v4648_v60  ;;  %v358_v60 = vld [vmem:[#allocation5 + $0x728] sm:$0xff] }
  0xea   :  { %2739 = vmatpush1.bf16.msra.mxu0 %v4503_v63  ;;  %v4575_v63 = vcombine.low %v362_v49, %v366_v50  ;;  %v478_v24 = vld [vmem:[#allocation5 + $0xae8] sm:$0xff]  ;;  %v179_v49 = vld [vmem:[#allocation5 + $0x190] sm:$0xff] }
  0xeb   :  { %2740 = vmatprep.subr.bf16.mxu0 %v4496_v1  ;;  %v4568_v1 = vcombine.high %v354_v57, %v358_v60  ;;  %v322_v30 = vld [vmem:[#allocation5 + $0x608] sm:$0xff]  ;;  %v183_v50 = vld [vmem:[#allocation5 + $0x1b0] sm:$0xff] }
  0xec   :  { %2776 = vmatpush1.bf16.msra.mxu1 %v4647_v0  ;;  %v4719_v0 = vcombine.low %v506_v51, %v510_v52  ;;  %v326_v31 = vld [vmem:[#allocation5 + $0x628] sm:$0xff] }
  0xed   :  { %2777 = vmatprep.subr.bf16.mxu1 %v4640_v4  ;;  %v350_v4 = vld [vmem:[#allocation5 + $0x6e8] sm:$0xff] }
  0xee   :  { %2741 = vmatpush1.bf16.msra.mxu0 %v4495_v7  ;;  %v4567_v7 = vcombine.low %v354_v57, %v358_v60  ;;  %v466_v34 = vld [vmem:[#allocation5 + $0xa88] sm:$0xff]  ;;  %v171_v57 = vld [vmem:[#allocation5 + $0x150] sm:$0xff] }
  0xef   :  { %2742 = vmatprep.subr.bf16.mxu0 %v4488_v9  ;;  %v4560_v9 = vcombine.high %v346_v3, %v350_v4  ;;  %v470_v35 = vld [vmem:[#allocation5 + $0xaa8] sm:$0xff]  ;;  %v175_v60 = vld [vmem:[#allocation5 + $0x170] sm:$0xff] }
  0xf0   :  { %2778 = vmatpush1.bf16.msra.mxu1 %v4639_v8  ;;  %v4711_v8 = vcombine.low %v498_v61, %v502_v62  ;;  %v458_v43 = vld [vmem:[#allocation5 + $0xa48] sm:$0xff] }
  0xf1   :  { %2779 = vmatprep.subr.bf16.mxu1 %v4632_v10  ;;  %v4704_v10 = vcombine.high %v490_v5, %v494_v6  ;;  %v462_v44 = vld [vmem:[#allocation5 + $0xa68] sm:$0xff] }
  0xf2   :  { %2743 = vmatpush1.bf16.msra.mxu0 %v4487_v15  ;;  %v4559_v15 = vcombine.low %v346_v3, %v350_v4  ;;  %v450_v51 = vld [vmem:[#allocation5 + $0xa08] sm:$0xff]  ;;  %v163_v3 = vld [vmem:[#allocation5 + $0x110] sm:$0xff] }
  0xf3   :  { %2744 = vmatprep.subr.bf16.mxu0 %v4480_v18  ;;  %v4552_v18 = vcombine.high %v338_v11, %v342_v12  ;;  %v454_v52 = vld [vmem:[#allocation5 + $0xa28] sm:$0xff]  ;;  %v167_v4 = vld [vmem:[#allocation5 + $0x130] sm:$0xff] }
  0xf4   :  { %2780 = vmatpush1.bf16.msra.mxu1 %v4631_v17  ;;  %v4703_v17 = vcombine.low %v490_v5, %v494_v6  ;;  %v514_v61 = vld [vmem:[#allocation5 + $0xc08] sm:$0xff]  ;;  %v315_v5 = vld [vmem:[#allocation5 + $0x5d0] sm:$0xff] }
  0xf5   :  { %2781 = vmatprep.subr.bf16.mxu1 %v4624_v20  ;;  %v4696_v20 = vcombine.high %v482_v13, %v486_v14  ;;  %v518_v62 = vld [vmem:[#allocation5 + $0xc28] sm:$0xff]  ;;  %v319_v6 = vld [vmem:[#allocation5 + $0x5f0] sm:$0xff] }
  0xf6   :  { %2745 = vmatpush1.bf16.msra.mxu0 %v4479_v25  ;;  %v4551_v25 = vcombine.low %v338_v11, %v342_v12  ;;  %v155_v11 = vld [vmem:[#allocation5 + $0xd0] sm:$0xff] }
  0xf7   :  { %2746 = vmatprep.subr.bf16.mxu0 %v4472_v27  ;;  %v4544_v27 = vcombine.high %v330_v21, %v334_v22  ;;  %v159_v12 = vld [vmem:[#allocation5 + $0xf0] sm:$0xff] }
  0xf8   :  { %2782 = vmatpush1.bf16.msra.mxu1 %v4623_v26  ;;  %v4695_v26 = vcombine.low %v482_v13, %v486_v14  ;;  %v4377_v13 = vcombine.low %v163_v3, %v167_v4  ;;  %v4370_v14 = vcombine.high %v155_v11, %v159_v12 }
  0xf9   :  { %2783 = vmatprep.subr.bf16.mxu1 %v4616_v29  ;;  %v4688_v29 = vcombine.high %v474_v23, %v478_v24 }
  0xfa   :  { %2747 = vmatpush1.bf16.msra.mxu0 %v4471_v36  ;;  %v4543_v36 = vcombine.low %v330_v21, %v334_v22  ;;  %v4369_v21 = vcombine.low %v155_v11, %v159_v12  ;;  %v4529_v22 = vcombine.low %v315_v5, %v319_v6 }
  0xfb   :  { %2748 = vmatprep.subr.bf16.mxu0 %v4592_v39  ;;  %v4536_v39 = vcombine.high %v322_v30, %v326_v31 }
  0xfc   :  { %2784 = vmatpush1.bf16.msra.mxu1 %v4615_v38  ;;  %v4687_v38 = vcombine.low %v474_v23, %v478_v24 }
  0xfd   :  { %2785 = vmatprep.subr.bf16.mxu1 %v4608_v40  ;;  %v4680_v40 = vcombine.high %v466_v34, %v470_v35 }
  0xfe   :  { %2749 = vmatpush2.bf16.msra.mxu0 %v4591_v45  ;;  %v4535_v45 = vcombine.low %v322_v30, %v326_v31 }
  0xff   :  { %2750 = vmatprep.subr.bf16.mxu0 %v4584_v47  ;;  %v4402_v47 = vcombine.high %v187_v41, %v191_v42 }
 0x100   :  { %2786 = vmatpush1.bf16.msra.mxu1 %v4607_v46  ;;  %v4679_v46 = vcombine.low %v466_v34, %v470_v35 }
 0x101   :  { %2787 = vmatprep.subr.bf16.mxu1 %v4600_v48  ;;  %v4672_v48 = vcombine.high %v458_v43, %v462_v44 }
 0x102   :  { %2751 = vmatpush2.bf16.msra.mxu0 %v4583_v53  ;;  %v4401_v53 = vcombine.low %v187_v41, %v191_v42 }
 0x103   :  { %2752 = vmatprep.subr.bf16.mxu0 %v4576_v55  ;;  %v4394_v55 = vcombine.high %v179_v49, %v183_v50 }
 0x104   :  { %2788 = vmatpush1.bf16.msra.mxu1 %v4599_v54  ;;  %v4671_v54 = vcombine.low %v458_v43, %v462_v44 }
 0x105   :  { %2789 = vmatprep.subr.bf16.mxu1 %v4720_v56  ;;  %v4664_v56 = vcombine.high %v450_v51, %v454_v52 }
 0x106   :  { %2753 = vmatpush2.bf16.msra.mxu0 %v4575_v63  ;;  %v4393_v63 = vcombine.low %v179_v49, %v183_v50 }
 0x107   :  { %2754 = vmatprep.subr.bf16.mxu0 %v4568_v1  ;;  %v4386_v1 = vcombine.high %v171_v57, %v175_v60 }
 0x108   :  { %2790 = vmatpush2.bf16.msra.mxu1 %v4719_v0  ;;  %v4663_v0 = vcombine.low %v450_v51, %v454_v52 }
 0x109   :  { %2791 = vmatprep.subr.bf16.mxu1 %v4712_v2  ;;  %v4728_v2 = vcombine.high %v514_v61, %v518_v62 }
 0x10a   :  { %2755 = vmatpush2.bf16.msra.mxu0 %v4567_v7  ;;  %v4385_v7 = vcombine.low %v171_v57, %v175_v60 }
 0x10b   :  { %2756 = vmatprep.subr.bf16.mxu0 %v4560_v9  ;;  %v4378_v9 = vcombine.high %v163_v3, %v167_v4 }
 0x10c   :  { %2792 = vmatpush2.bf16.msra.mxu1 %v4711_v8  ;;  %v4727_v8 = vcombine.low %v514_v61, %v518_v62 }
 0x10d   :  { %2793 = vmatprep.subr.bf16.mxu1 %v4704_v10  ;;  %v4530_v10 = vcombine.high %v315_v5, %v319_v6 }
 0x10e   :  { %2757 = vmatpush2.bf16.msra.mxu0 %v4559_v15  ;;  %v147_v15 = vld [vmem:[#allocation5 + $0x90] sm:$0xff] }
 0x10f   :  { %2758 = vmatprep.subr.bf16.mxu0 %v4552_v18  ;;  %v307_v18 = vld [vmem:[#allocation5 + $0x590] sm:$0xff] }
 0x110   :  { %2794 = vmatpush2.bf16.msra.mxu1 %v4703_v17  ;;  %v151_v17 = vld [vmem:[#allocation5 + $0xb0] sm:$0xff] }
 0x111   :  { %2795 = vmatprep.subr.bf16.mxu1 %v4696_v20  ;;  %v311_v20 = vld [vmem:[#allocation5 + $0x5b0] sm:$0xff]  ;;  %v4362_v23 = vcombine.high %v147_v15, %v151_v17  ;;  %v4361_v30 = vcombine.low %v147_v15, %v151_v17 }
 0x112   :  { %2759 = vmatpush2.bf16.msra.mxu0 %v4551_v25  ;;  %v4522_v24 = vcombine.high %v307_v18, %v311_v20  ;;  %v139_v25 = vld [vmem:[#allocation5 + $0x50] sm:$0xff]  ;;  %v4521_v31 = vcombine.low %v307_v18, %v311_v20 }
 0x113   :  { %2760 = vmatprep.subr.bf16.mxu0 %v4544_v27  ;;  %v299_v27 = vld [vmem:[#allocation5 + $0x550] sm:$0xff] }
 0x114   :  { %2796 = vmatpush2.bf16.msra.mxu1 %v4695_v26  ;;  %v143_v26 = vld [vmem:[#allocation5 + $0x70] sm:$0xff] }
 0x115   :  { %2797 = vmatprep.subr.bf16.mxu1 %v4688_v29  ;;  %v303_v29 = vld [vmem:[#allocation5 + $0x570] sm:$0xff]  ;;  %v4354_v34 = vcombine.high %v139_v25, %v143_v26  ;;  %v4353_v41 = vcombine.low %v139_v25, %v143_v26 }
 0x116   :  { %2761 = vmatpush2.bf16.msra.mxu0 %v4543_v36  ;;  %v4514_v35 = vcombine.high %v299_v27, %v303_v29  ;;  %v131_v36 = vld [vmem:[#allocation5 + $0x10] sm:$0xff]  ;;  %v4513_v42 = vcombine.low %v299_v27, %v303_v29 }
 0x117   :  { %2762 = vmatprep.subr.bf16.mxu0 %v4536_v39  ;;  %v291_v39 = vld [vmem:[#allocation5 + $0x510] sm:$0xff] }
 0x118   :  { %2798 = vmatpush2.bf16.msra.mxu1 %v4687_v38  ;;  %v135_v38 = vld [vmem:[#allocation5 + $0x30] sm:$0xff] }
 0x119   :  { %2799 = vmatprep.subr.bf16.mxu1 %v4680_v40  ;;  %v295_v40 = vld [vmem:[#allocation5 + $0x530] sm:$0xff]  ;;  %v4346_v43 = vcombine.high %v131_v36, %v135_v38  ;;  %v4345_v49 = vcombine.low %v131_v36, %v135_v38 }
 0x11a   :  { %2763 = vmatpush2.bf16.msra.mxu0 %v4535_v45  ;;  %v4506_v44 = vcombine.high %v291_v39, %v295_v40  ;;  %v251_v45 = vld [vmem:[#allocation5 + $0x3d0] sm:$0xff]  ;;  %v4505_v50 = vcombine.low %v291_v39, %v295_v40 }
 0x11b   :  { %2855 = vmatprep.subr.bf16.mxu0 %v4402_v47  ;;  %v283_v47 = vld [vmem:[#allocation5 + $0x4d0] sm:$0xff] }
 0x11c   :  { %2800 = vmatpush2.bf16.msra.mxu1 %v4679_v46  ;;  %v255_v46 = vld [vmem:[#allocation5 + $0x3f0] sm:$0xff] }
 0x11d   :  { %2801 = vmatprep.subr.bf16.mxu1 %v4672_v48  ;;  %2765 = vmatmul.mubr.bf16.vlgmr.msra.gmra.mxu0 %v5382_v19  ;;  %v287_v48 = vld [vmem:[#allocation5 + $0x4f0] sm:$0xff]  ;;  %v4466_v51 = vcombine.high %v251_v45, %v255_v46  ;;  %v4465_v57 = vcombine.low %v251_v45, %v255_v46 }
 0x11e   :  { %2856 = vmatpush1.bf16.msra.mxu0 %v4401_v53  ;;  %2887 = vmatprep.mubr.bf16.mxu0 %v5374_v58  ;;  %v4498_v52 = vcombine.high %v283_v47, %v287_v48  ;;  %v243_v53 = vld [vmem:[#allocation5 + $0x390] sm:$0xff]  ;;  %v4497_v60 = vcombine.low %v283_v47, %v287_v48 }
 0x11f   :  { %2857 = vmatprep.subr.bf16.mxu0 %v4394_v55  ;;  %v275_v55 = vld [vmem:[#allocation5 + $0x490] sm:$0xff] }
 0x120   :  { %2802 = vmatpush2.bf16.msra.mxu1 %v4671_v54  ;;  %v247_v54 = vld [vmem:[#allocation5 + $0x3b0] sm:$0xff] }
 0x121   :  { %2803 = vmatprep.subr.bf16.mxu1 %v4664_v56  ;;  %v279_v56 = vld [vmem:[#allocation5 + $0x4b0] sm:$0xff]  ;;  %v4458_v61 = vcombine.high %v243_v53, %v247_v54  ;;  %v4457_v3 = vcombine.low %v243_v53, %v247_v54 }
 0x122   :  { %2858 = vmatpush1.bf16.msra.mxu0 %v4393_v63  ;;  %v4490_v62 = vcombine.high %v275_v55, %v279_v56  ;;  %v235_v63 = vld [vmem:[#allocation5 + $0x350] sm:$0xff]  ;;  %v4489_v4 = vcombine.low %v275_v55, %v279_v56 }
 0x123   :  { %2859 = vmatprep.subr.bf16.mxu0 %v4386_v1  ;;  %v267_v1 = vld [vmem:[#allocation5 + $0x450] sm:$0xff] }
 0x124   :  { %2804 = vmatpush2.bf16.msra.mxu1 %v4663_v0  ;;  %v239_v0 = vld [vmem:[#allocation5 + $0x370] sm:$0xff] }
 0x125   :  { %2828 = vmatprep.subr.bf16.mxu1 %v4728_v2  ;;  %v271_v2 = vld [vmem:[#allocation5 + $0x470] sm:$0xff]  ;;  %v4450_v5 = vcombine.high %v235_v63, %v239_v0  ;;  %v4449_v11 = vcombine.low %v235_v63, %v239_v0  ;;  %v5411_v0 = vld [vmem:[#allocation7] sm:$0xff] }
 0x126   :  { %2860 = vmatpush1.bf16.msra.mxu0 %v4385_v7  ;;  %v4482_v6 = vcombine.high %v267_v1, %v271_v2  ;;  %v227_v7 = vld [vmem:[#allocation5 + $0x310] sm:$0xff]  ;;  %v4481_v12 = vcombine.low %v267_v1, %v271_v2 }
 0x127   :  { %2806 = vmatmul.mubr.bf16.vlgmr.msra.gmra.mxu1 %v5395_v32  ;;  %2861 = vmatprep.subr.bf16.mxu0 %v4378_v9  ;;  %v259_v9 = vld [vmem:[#allocation5 + $0x410] sm:$0xff] }
 0x128   :  { %2829 = vmatpush1.bf16.msra.mxu1 %v4727_v8  ;;  %2846 = vmatprep.mubr.bf16.mxu1 %v5311_v33  ;;  %v231_v8 = vld [vmem:[#allocation5 + $0x330] sm:$0xff] }
 0x129   :  { %2896 = vmatprep.subr.bf16.mxu1 %v4530_v10  ;;  %v263_v10 = vld [vmem:[#allocation5 + $0x430] sm:$0xff] }
 0x12a   :  { %2862 = vmatpush1.bf16.msra.mxu0 %v4377_v13  ;;  %v4442_v13 = vcombine.high %v227_v7, %v231_v8  ;;  %v219_v15 = vld [vmem:[#allocation5 + $0x2d0] sm:$0xff] }
 0x12b   :  { %2863 = vmatprep.subr.bf16.mxu0 %v4370_v14  ;;  %v4474_v14 = vcombine.high %v259_v9, %v263_v10  ;;  %v223_v17 = vld [vmem:[#allocation5 + $0x2f0] sm:$0xff] }
 0x12c   :  { %v379_v18 = vld [vmem:[#allocation5 + $0x7d0] sm:$0xff] }
 0x12d   :  { %v383_v20 = vld [vmem:[#allocation5 + $0x7f0] sm:$0xff] }
 0x12e   :  { %2864 = vmatpush1.bf16.msra.mxu0 %v4369_v21  ;;  %v4441_v21 = vcombine.low %v227_v7, %v231_v8  ;;  %v211_v25 = vld [vmem:[#allocation5 + $0x290] sm:$0xff] }
 0x12f   :  { %4734 = vmatmul.mubr.msk.bf16.vlgmr.msra.gmra.mxu1 %vm2523_vm0, %v5390_v37  ;;  %2865 = vmatprep.subr.bf16.mxu0 %v4362_v23  ;;  %v4434_v23 = vcombine.high %v219_v15, %v223_v17  ;;  %v215_v26 = vld [vmem:[#allocation5 + $0x2b0] sm:$0xff] }
 0x130   :  { %2897 = vmatpush1.bf16.msra.mxu1 %v4529_v22  ;;  %2928 = vmatprep.mubr.bf16.mxu1 %v5376_v59  ;;  %v4473_v22 = vcombine.low %v259_v9, %v263_v10  ;;  %v371_v27 = vld [vmem:[#allocation5 + $0x790] sm:$0xff] }
 0x131   :  { %2898 = vmatprep.subr.bf16.mxu1 %v4522_v24  ;;  %v4594_v24 = vcombine.high %v379_v18, %v383_v20  ;;  %v375_v29 = vld [vmem:[#allocation5 + $0x7b0] sm:$0xff] }
 0x132   :  { %2866 = vmatpush1.bf16.msra.mxu0 %v4361_v30  ;;  %v4433_v30 = vcombine.low %v219_v15, %v223_v17  ;;  %v203_v36 = vld [vmem:[#allocation5 + $0x250] sm:$0xff] }
 0x133   :  { %2867 = vmatprep.subr.bf16.mxu0 %v4354_v34  ;;  %v4426_v34 = vcombine.high %v211_v25, %v215_v26  ;;  %v207_v38 = vld [vmem:[#allocation5 + $0x270] sm:$0xff] }
 0x134   :  { %2899 = vmatpush1.bf16.msra.mxu1 %v4521_v31  ;;  %v4593_v31 = vcombine.low %v379_v18, %v383_v20  ;;  %v363_v39 = vld [vmem:[#allocation5 + $0x750] sm:$0xff] }
 0x135   :  { %2900 = vmatprep.subr.bf16.mxu1 %v4514_v35  ;;  %v4586_v35 = vcombine.high %v371_v27, %v375_v29  ;;  %v367_v40 = vld [vmem:[#allocation5 + $0x770] sm:$0xff] }
 0x136   :  { %2868 = vmatpush1.bf16.msra.mxu0 %v4353_v41  ;;  %v4425_v41 = vcombine.low %v211_v25, %v215_v26  ;;  %v4578_v45 = vcombine.high %v363_v39, %v367_v40  ;;  %v195_v46 = vld [vmem:[#allocation5 + $0x210] sm:$0xff] }
 0x137   :  { %2869 = vmatprep.subr.bf16.mxu0 %v4346_v43  ;;  %v4585_v43 = vcombine.low %v371_v27, %v375_v29  ;;  %v199_v47 = vld [vmem:[#allocation5 + $0x230] sm:$0xff] }
 0x138   :  { %2901 = vmatpush1.bf16.msra.mxu1 %v4513_v42  ;;  %v523_v42 = vlaneseq  ;;  %v355_v48 = vld [vmem:[#allocation5 + $0x710] sm:$0xff]  ;;  %v4410_v53 = vcombine.high %v195_v46, %v199_v47 }
 0x139   :  { %2902 = vmatprep.subr.bf16.mxu1 %v4506_v44  ;;  %v4418_v44 = vcombine.high %v203_v36, %v207_v38  ;;  %v443_v55 = vld [vmem:[#allocation5 + $0x9d0] sm:$0xff] }
 0x13a   :  { %2870 = vmatpush1.bf16.msra.mxu0 %v4345_v49  ;;  %v359_v49 = vld [vmem:[#allocation5 + $0x730] sm:$0xff] }
 0x13b   :  { %2871 = vmatprep.subr.bf16.mxu0 %v4466_v51  ;;  %v5408_v51 = vshrl.u32 %v523_v42, 7  ;;  %v4570_v54 = vcombine.high %v355_v48, %v359_v49  ;;  %v447_v56 = vld [vmem:[#allocation5 + $0x9f0] sm:$0xff]  ;;  %v4569_v63 = vcombine.low %v355_v48, %v359_v49 }
 0x13c   :  { %2903 = vmatpush1.bf16.msra.mxu1 %v4505_v50  ;;  %v4417_v50 = vcombine.low %v203_v36, %v207_v38  ;;  %v4658_v1 = vcombine.high %v443_v55, %v447_v56  ;;  %v343_v7 = vld [vmem:[#allocation5 + $0x6b0] sm:$0xff]  ;;  %v4657_v9 = vcombine.low %v443_v55, %v447_v56 }
 0x13d   :  { %2904 = vmatprep.subr.bf16.mxu1 %v4498_v52  ;;  %v4577_v52 = vcombine.low %v363_v39, %v367_v40  ;;  %v431_v15 = vld [vmem:[#allocation5 + $0x970] sm:$0xff] }
 0x13e   :  { %2872 = vmatpush2.bf16.msra.mxu0 %v4465_v57  ;;  %v347_v57 = vld [vmem:[#allocation5 + $0x6d0] sm:$0xff] }
 0x13f   :  { %2873 = vmatprep.subr.bf16.mxu0 %v4458_v61  ;;  %v4409_v61 = vcombine.low %v195_v46, %v199_v47  ;;  %v331_v18 = vld [vmem:[#allocation5 + $0x650] sm:$0xff] }
 0x140   :  { %2905 = vmatpush1.bf16.msra.mxu1 %v4497_v60  ;;  %v351_v60 = vld [vmem:[#allocation5 + $0x6f0] sm:$0xff] }
 0x141   :  { %2906 = vmatprep.subr.bf16.mxu1 %v4490_v62  ;;  %v525_v62 = vsub.s32 0, %v5408_v51  ;;  %v4562_v2 = vcombine.high %v347_v57, %v351_v60  ;;  %v4561_v10 = vcombine.low %v347_v57, %v351_v60  ;;  %v335_v20 = vld [vmem:[#allocation5 + $0x670] sm:$0xff] }
 0x142   :  { %2874 = vmatpush2.bf16.msra.mxu0 %v4457_v3  ;;  %v529_v3 = vsub.s32 1, %v5408_v51  ;;  %v323_v36 = vld [vmem:[#allocation5 + $0x610] sm:$0xff] }
 0x143   :  { %2875 = vmatprep.subr.bf16.mxu0 %v4450_v5  ;;  %v439_v5 = vld [vmem:[#allocation5 + $0x9b0] sm:$0xff]  ;;  %v526_v8 = vrot.slane %v5411_v0, %v525_v62 }
 0x144   :  { %2907 = vmatpush1.bf16.msra.mxu1 %v4489_v4  ;;  %v435_v4 = vld [vmem:[#allocation5 + $0x990] sm:$0xff] }
 0x145   :  { %2908 = vmatprep.subr.bf16.mxu1 %v4482_v6  ;;  %v339_v6 = vld [vmem:[#allocation5 + $0x690] sm:$0xff] }
 0x146   :  { %2876 = vmatpush2.bf16.msra.mxu0 %v4449_v11  ;;  %v4650_v11 = vcombine.high %v435_v4, %v439_v5  ;;  %v4553_v25 = vcombine.low %v339_v6, %v343_v7  ;;  %v327_v38 = vld [vmem:[#allocation5 + $0x630] sm:$0xff] }
 0x147   :  { %2877 = vmatprep.subr.bf16.mxu0 %v4442_v13  ;;  %v4554_v13 = vcombine.high %v339_v6, %v343_v7  ;;  %v4538_v47 = vcombine.high %v323_v36, %v327_v38  ;;  %v411_v48 = vld [vmem:[#allocation5 + $0x8d0] sm:$0xff]  ;;  %v4537_v55 = vcombine.low %v323_v36, %v327_v38 }
 0x148   :  { %2909 = vmatpush1.bf16.msra.mxu1 %v4481_v12  ;;  %v530_v12 = vrot.slane %v5411_v0, %v529_v3  ;;  %v415_v49 = vld [vmem:[#allocation5 + $0x8f0] sm:$0xff] }
 0x149   :  { %2910 = vmatprep.subr.bf16.mxu1 %v4474_v14  ;;  %v427_v14 = vld [vmem:[#allocation5 + $0x950] sm:$0xff]  ;;  %v4626_v56 = vcombine.high %v411_v48, %v415_v49 }
 0x14a   :  { %2878 = vmatpush2.bf16.msra.mxu0 %v4441_v21  ;;  %v4642_v26 = vcombine.high %v427_v14, %v431_v15  ;;  %v4641_v42 = vcombine.low %v427_v14, %v431_v15  ;;  %v387_v14 = vld [vmem:[#allocation5 + $0x810] sm:$0xff] }
 0x14b   :  { %2879 = vmatprep.subr.bf16.mxu0 %v4434_v23  ;;  %v4649_v23 = vcombine.low %v435_v4, %v439_v5  ;;  %v4625_v5 = vcombine.low %v411_v48, %v415_v49  ;;  %v391_v15 = vld [vmem:[#allocation5 + $0x830] sm:$0xff]  ;;  %v156_v48 = vld [vmem:[#allocation5 + $0xd8] sm:$0xff] }
 0x14c   :  { %2911 = vmatpush1.bf16.msra.mxu1 %v4473_v22  ;;  %v499_v36 = vld [vmem:[#allocation5 + $0xb90] sm:$0xff]  ;;  %v160_v49 = vld [vmem:[#allocation5 + $0xf8] sm:$0xff] }
 0x14d   :  { %2912 = vmatprep.subr.bf16.mxu1 %v4594_v24  ;;  %v503_v38 = vld [vmem:[#allocation5 + $0xbb0] sm:$0xff] }
 0x14e   :  { %2880 = vmatpush2.bf16.msra.mxu0 %v4433_v30 }
 0x14f   :  { %2881 = vmatprep.subr.bf16.mxu0 %v4426_v34  ;;  %v419_v34 = vld [vmem:[#allocation5 + $0x910] sm:$0xff] }
 0x150   :  { %2913 = vmatpush2.bf16.msra.mxu1 %v4593_v31  ;;  %v4546_v31 = vcombine.high %v331_v18, %v335_v20 }
 0x151   :  { %2914 = vmatprep.subr.bf16.mxu1 %v4586_v35  ;;  %v423_v35 = vld [vmem:[#allocation5 + $0x930] sm:$0xff] }
 0x152   :  { %2882 = vmatpush2.bf16.msra.mxu0 %v4425_v41 }
 0x153   :  { %2883 = vmatprep.subr.bf16.mxu0 %v4418_v44  ;;  %v4634_v44 = vcombine.high %v419_v34, %v423_v35 }
 0x154   :  { %2915 = vmatpush2.bf16.msra.mxu1 %v4585_v43  ;;  %v4545_v43 = vcombine.low %v331_v18, %v335_v20  ;;  %v184_v18 = vld [vmem:[#allocation5 + $0x1b8] sm:$0xff] }
 0x155   :  { %2916 = vmatprep.subr.bf16.mxu1 %v4578_v45 }
 0x156   :  { %2884 = vmatpush2.bf16.msra.mxu0 %v4417_v50  ;;  %v515_v50 = vld [vmem:[#allocation5 + $0xc10] sm:$0xff] }
 0x157   :  { %2885 = vmatprep.subr.bf16.mxu0 %v4410_v53 }
 0x158   :  { %2917 = vmatpush2.bf16.msra.mxu1 %v4577_v52  ;;  %v519_v52 = vld [vmem:[#allocation5 + $0xc30] sm:$0xff] }
 0x159   :  { %2918 = vmatprep.subr.bf16.mxu1 %v4570_v54  ;;  %v4633_v54 = vcombine.low %v419_v34, %v423_v35  ;;  %v4730_v60 = vcombine.high %v515_v50, %v519_v52  ;;  %v4729_v6 = vcombine.low %v515_v50, %v519_v52  ;;  %v4713_v50 = vcombine.low %v499_v36, %v503_v38 }
 0x15a   :  { %2886 = vmatpush2.bf16.msra.mxu0 %v4409_v61  ;;  %v403_v61 = vld [vmem:[#allocation5 + $0x890] sm:$0xff] }
 0x15b   :  { %2937 = vmatprep.subr.bf16.mxu0 %v4658_v1  ;;  %v188_v1 = vld [vmem:[#allocation5 + $0x1d8] sm:$0xff] }
 0x15c   :  { %2919 = vmatpush2.bf16.msra.mxu1 %v4569_v63  ;;  %v407_v63 = vld [vmem:[#allocation5 + $0x8b0] sm:$0xff] }
 0x15d   :  { %2920 = vmatprep.subr.bf16.mxu1 %v4562_v2  ;;  %v2561_v17 = vpop.f32.mrf.mxu0  ;;  %2888 = vmatmul.mubr.bf16.vlgmr.msra.gmra.mxu0 %v5380_v16  ;;  %v192_v2 = vld [vmem:[#allocation5 + $0x1f8] sm:$0xff]  ;;  %v4618_v7 = vcombine.high %v403_v61, %v407_v63 }
 0x15e   :  { %v2562_v21 = vadd.f32 %v2561_v17, %v526_v8  ;;  %2938 = vmatpush1.bf16.msra.mxu0 %v4657_v9  ;;  %2969 = vmatprep.mubr.bf16.mxu0 %v5385_v28  ;;  %v4404_v9 = vcombine.high %v188_v1, %v192_v2  ;;  %v180_v17 = vld [vmem:[#allocation5 + $0x198] sm:$0xff] }
 0x15f   :  { %v2602_v22 = vpop.f32.mrf.mxu1  ;;  %v2563_v24 = vpop.f32.mrf.mxu0  ;;  %2939 = vmatprep.subr.bf16.mxu0 %v4650_v11  ;;  %v399_v11 = vld [vmem:[#allocation5 + $0x870] sm:$0xff] }
 0x160   :  { %2921 = vmatpush2.bf16.msra.mxu1 %v4561_v10  ;;  %v5422_v27 = vadd.f32 %v2602_v22, %v2562_v21  ;;  %v2564_v29 = vadd.f32 %v2563_v24, %v530_v12  ;;  %v395_v10 = vld [vmem:[#allocation5 + $0x850] sm:$0xff]  ;;  %v4617_v12 = vcombine.low %v403_v61, %v407_v63  ;;  %v4403_v21 = vcombine.low %v188_v1, %v192_v2  ;;  %v152_v61 = vld [vmem:[#allocation5 + $0xb8] sm:$0xff] }
 0x161   :  { %v2604_v30 = vpop.f32.mrf.mxu1  ;;  %2922 = vmatprep.subr.bf16.mxu1 %v4554_v13  ;;  %v2565_v39 = vpop.f32.mrf.mxu0  ;;  %v4610_v13 = vcombine.high %v395_v10, %v399_v11  ;;  %v4609_v20 = vcombine.low %v395_v10, %v399_v11  ;;  %v4602_v22 = vcombine.high %v387_v14, %v391_v15  ;;  %v507_v24 = vld [vmem:[#allocation5 + $0xbd0] sm:$0xff]  ;;  %v4371_v1 = vcombine.low %v156_v48, %v160_v49 }
 0x162   :  { %v5424_v40 = vadd.f32 %v2604_v30, %v2564_v29  ;;  %2940 = vmatpush1.bf16.msra.mxu0 %v4649_v23  ;;  %v4396_v23 = vcombine.high %v180_v17, %v184_v18  ;;  %v176_v29 = vld [vmem:[#allocation5 + $0x178] sm:$0xff]  ;;  %v4601_v30 = vcombine.low %v387_v14, %v391_v15  ;;  %v471_v14 = vld [vmem:[#allocation5 + $0xab0] sm:$0xff] }
 0x163   :  { %v2606_v41 = vpop.f32.mrf.mxu1  ;;  %2941 = vmatprep.subr.bf16.mxu0 %v4642_v26  ;;  %v2566_v45 = vpop.f32.mrf.mxu0  ;;  %v172_v26 = vld [vmem:[#allocation5 + $0x158] sm:$0xff] }
 0x164   :  { %2923 = vmatpush2.bf16.msra.mxu1 %v4553_v25  ;;  %v511_v25 = vld [vmem:[#allocation5 + $0xbf0] sm:$0xff]  ;;  %v4388_v35 = vcombine.high %v172_v26, %v176_v29  ;;  %v164_v39 = vld [vmem:[#allocation5 + $0x118] sm:$0xff] }
 0x165   :  { %v2607_v46 = vpop.f32.mrf.mxu1  ;;  %2924 = vmatprep.subr.bf16.mxu1 %v4546_v31  ;;  %v4395_v31 = vcombine.low %v180_v17, %v184_v18  ;;  %v4722_v34 = vcombine.high %v507_v24, %v511_v25  ;;  %v168_v41 = vld [vmem:[#allocation5 + $0x138] sm:$0xff] }
 0x166   :  { %2942 = vmatpush1.bf16.msra.mxu0 %v4641_v42  ;;  %v4721_v42 = vcombine.low %v507_v24, %v511_v25  ;;  %v4380_v45 = vcombine.high %v164_v39, %v168_v41  ;;  %v491_v46 = vld [vmem:[#allocation5 + $0xb50] sm:$0xff]  ;;  %v4379_v52 = vcombine.low %v164_v39, %v168_v41  ;;  %v132_v15 = vld [vmem:[#allocation5 + $0x18] sm:$0xff] }
 0x167   :  { %v5426_v53 = vpop.f32.mrf.mxu1  ;;  %2943 = vmatprep.subr.bf16.mxu0 %v4634_v44  ;;  %v4714_v44 = vcombine.high %v499_v36, %v503_v38  ;;  %v136_v17 = vld [vmem:[#allocation5 + $0x38] sm:$0xff]  ;;  %v463_v24 = vld [vmem:[#allocation5 + $0xa70] sm:$0xff] }
 0x168   :  { %2925 = vmatpush2.bf16.msra.mxu1 %v4545_v43  ;;  %v4387_v43 = vcombine.low %v172_v26, %v176_v29  ;;  %v252_v25 = vld [vmem:[#allocation5 + $0x3d8] sm:$0xff]  ;;  %v455_v36 = vld [vmem:[#allocation5 + $0xa30] sm:$0xff] }
 0x169   :  { %v5428_v57 = vpop.f32.mrf.mxu1  ;;  %2926 = vmatprep.subr.bf16.mxu1 %v4538_v47  ;;  %v495_v47 = vld [vmem:[#allocation5 + $0xb70] sm:$0xff]  ;;  %v256_v26 = vld [vmem:[#allocation5 + $0x3f8] sm:$0xff] }
 0x16a   :  { %2944 = vmatpush1.bf16.msra.mxu0 %v4633_v54  ;;  %v4372_v54 = vcombine.high %v156_v48, %v160_v49  ;;  %v4705_v63 = vcombine.low %v491_v46, %v495_v47  ;;  %v244_v38 = vld [vmem:[#allocation5 + $0x398] sm:$0xff] }
 0x16b   :  { %v2688_v4 = vpop.f32.mrf.mxu1  ;;  %2945 = vmatprep.subr.bf16.mxu0 %v4626_v56  ;;  %v487_v56 = vld [vmem:[#allocation5 + $0xb30] sm:$0xff]  ;;  %v248_v39 = vld [vmem:[#allocation5 + $0x3b8] sm:$0xff] }
 0x16c   :  { %2927 = vmatpush2.bf16.msra.mxu1 %v4537_v55  ;;  %v483_v55 = vld [vmem:[#allocation5 + $0xb10] sm:$0xff]  ;;  %v240_v48 = vld [vmem:[#allocation5 + $0x378] sm:$0xff] }
 0x16d   :  { %v2689_v8 = vpop.f32.mrf.mxu1  ;;  %2992 = vmatprep.subr.bf16.mxu1 %v4730_v60  ;;  %v148_v60 = vld [vmem:[#allocation5 + $0x98] sm:$0xff]  ;;  %v4698_v2 = vcombine.high %v483_v55, %v487_v56 }
 0x16e   :  { %2946 = vmatpush1.bf16.msra.mxu0 %v4625_v5  ;;  %v4364_v4 = vcombine.high %v148_v60, %v152_v61  ;;  %v475_v5 = vld [vmem:[#allocation5 + $0xad0] sm:$0xff]  ;;  %v144_v8 = vld [vmem:[#allocation5 + $0x78] sm:$0xff]  ;;  %v4363_v10 = vcombine.low %v148_v60, %v152_v61 }
 0x16f   :  { %2929 = vmatmul.mubr.bf16.vlgmr.msra.gmra.mxu1 %v5382_v19  ;;  %2947 = vmatprep.subr.bf16.mxu0 %v4618_v7  ;;  %v140_v7 = vld [vmem:[#allocation5 + $0x58] sm:$0xff] }
 0x170   :  { %2993 = vmatpush1.bf16.msra.mxu1 %v4729_v6  ;;  %3010 = vmatprep.mubr.bf16.mxu1 %v5311_v33  ;;  %v479_v6 = vld [vmem:[#allocation5 + $0xaf0] sm:$0xff]  ;;  %v232_v60 = vld [vmem:[#allocation5 + $0x338] sm:$0xff] }
 0x171   :  { %3019 = vmatprep.subr.bf16.mxu1 %v4404_v9  ;;  %v4697_v9 = vcombine.low %v483_v55, %v487_v56  ;;  %v4690_v11 = vcombine.high %v475_v5, %v479_v6  ;;  %v4689_v18 = vcombine.low %v475_v5, %v479_v6  ;;  %v312_v55 = vld [vmem:[#allocation5 + $0x5b8] sm:$0xff] }
 0x172   :  { %2948 = vmatpush1.bf16.msra.mxu0 %v4617_v12  ;;  %v4356_v12 = vcombine.high %v140_v7, %v144_v8  ;;  %v228_v56 = vld [vmem:[#allocation5 + $0x318] sm:$0xff] }
 0x173   :  { %2949 = vmatprep.subr.bf16.mxu0 %v4610_v13  ;;  %v467_v13 = vld [vmem:[#allocation5 + $0xa90] sm:$0xff]  ;;  %v304_v5 = vld [vmem:[#allocation5 + $0x578] sm:$0xff] }
 0x174   :  { %v4681_v29 = vcombine.low %v467_v13, %v471_v14 }
 0x176   :  { %2950 = vmatpush1.bf16.msra.mxu0 %v4609_v20  ;;  %v4355_v20 = vcombine.low %v140_v7, %v144_v8  ;;  %v220_v7 = vld [vmem:[#allocation5 + $0x2d8] sm:$0xff] }
 0x177   :  { %4735 = vmatmul.mubr.msk.bf16.vlgmr.msra.gmra.mxu1 %vm2523_vm0, %v5390_v37  ;;  %2951 = vmatprep.subr.bf16.mxu0 %v4602_v22  ;;  %v4348_v22 = vcombine.high %v132_v15, %v136_v17  ;;  %v224_v8 = vld [vmem:[#allocation5 + $0x2f8] sm:$0xff] }
 0x178   :  { %3020 = vmatpush1.bf16.msra.mxu1 %v4403_v21  ;;  %3051 = vmatprep.mubr.bf16.mxu1 %v5374_v58  ;;  %v4706_v58 = vcombine.high %v491_v46, %v495_v47  ;;  %v4682_v21 = vcombine.high %v467_v13, %v471_v14  ;;  %v320_v46 = vld [vmem:[#allocation5 + $0x5f8] sm:$0xff] }
 0x179   :  { %3021 = vmatprep.subr.bf16.mxu1 %v4396_v23  ;;  %v459_v23 = vld [vmem:[#allocation5 + $0xa50] sm:$0xff]  ;;  %v236_v47 = vld [vmem:[#allocation5 + $0x358] sm:$0xff] }
 0x17a   :  { %2952 = vmatpush1.bf16.msra.mxu0 %v4601_v30  ;;  %v4347_v30 = vcombine.low %v132_v15, %v136_v17  ;;  %v4673_v41 = vcombine.low %v459_v23, %v463_v24  ;;  %v4436_v17 = vcombine.high %v220_v7, %v224_v8 }
 0x17b   :  { %2953 = vmatprep.subr.bf16.mxu0 %v4722_v34  ;;  %v4468_v34 = vcombine.high %v252_v25, %v256_v26 }
 0x17c   :  { %3022 = vmatpush1.bf16.msra.mxu1 %v4395_v31  ;;  %v4674_v31 = vcombine.high %v459_v23, %v463_v24  ;;  %v4435_v24 = vcombine.low %v220_v7, %v224_v8 }
 0x17d   :  { %3023 = vmatprep.subr.bf16.mxu1 %v4388_v35  ;;  %v451_v35 = vld [vmem:[#allocation5 + $0xa10] sm:$0xff] }
 0x17e   :  { %2954 = vmatpush2.bf16.msra.mxu0 %v4721_v42  ;;  %v4467_v42 = vcombine.low %v252_v25, %v256_v26  ;;  %v4665_v49 = vcombine.low %v451_v35, %v455_v36 }
 0x17f   :  { %2955 = vmatprep.subr.bf16.mxu0 %v4714_v44  ;;  %v4460_v44 = vcombine.high %v244_v38, %v248_v39 }
 0x180   :  { %3024 = vmatpush1.bf16.msra.mxu1 %v4387_v43  ;;  %v4666_v43 = vcombine.high %v451_v35, %v455_v36 }
 0x181   :  { %3025 = vmatprep.subr.bf16.mxu1 %v4380_v45  ;;  %v316_v45 = vld [vmem:[#allocation5 + $0x5d8] sm:$0xff] }
 0x182   :  { %2956 = vmatpush2.bf16.msra.mxu0 %v4713_v50  ;;  %v4459_v50 = vcombine.low %v244_v38, %v248_v39  ;;  %v4531_v61 = vcombine.low %v316_v45, %v320_v46 }
 0x183   :  { %2957 = vmatprep.subr.bf16.mxu0 %v4706_v58  ;;  %v4452_v58 = vcombine.high %v236_v47, %v240_v48 }
 0x184   :  { %3026 = vmatpush1.bf16.msra.mxu1 %v4379_v52  ;;  %v4532_v52 = vcombine.high %v316_v45, %v320_v46 }
 0x185   :  { %3027 = vmatprep.subr.bf16.mxu1 %v4372_v54  ;;  %v308_v54 = vld [vmem:[#allocation5 + $0x598] sm:$0xff] }
 0x186   :  { %2958 = vmatpush2.bf16.msra.mxu0 %v4705_v63  ;;  %v4451_v63 = vcombine.low %v236_v47, %v240_v48 }
 0x187   :  { %2959 = vmatprep.subr.bf16.mxu0 %v4698_v2  ;;  %v4444_v2 = vcombine.high %v228_v56, %v232_v60 }
 0x188   :  { %3028 = vmatpush1.bf16.msra.mxu1 %v4371_v1  ;;  %v4524_v1 = vcombine.high %v308_v54, %v312_v55 }
 0x189   :  { %3029 = vmatprep.subr.bf16.mxu1 %v4364_v4  ;;  %v300_v4 = vld [vmem:[#allocation5 + $0x558] sm:$0xff] }
 0x18a   :  { %2960 = vmatpush2.bf16.msra.mxu0 %v4697_v9  ;;  %v4516_v13 = vcombine.high %v300_v4, %v304_v5 }
 0x18b   :  { %2961 = vmatprep.subr.bf16.mxu0 %v4690_v11  ;;  %v4443_v11 = vcombine.low %v228_v56, %v232_v60 }
 0x18c   :  { %3030 = vmatpush1.bf16.msra.mxu1 %v4363_v10  ;;  %v4523_v10 = vcombine.low %v308_v54, %v312_v55  ;;  %v444_v54 = vld [vmem:[#allocation5 + $0x9d8] sm:$0xff] }
 0x18d   :  { %3031 = vmatprep.subr.bf16.mxu1 %v4356_v12  ;;  %v448_v55 = vld [vmem:[#allocation5 + $0x9f8] sm:$0xff] }
 0x18e   :  { %2962 = vmatpush2.bf16.msra.mxu0 %v4689_v18  ;;  %v292_v18 = vld [vmem:[#allocation5 + $0x518] sm:$0xff]  ;;  %v4659_v7 = vcombine.low %v444_v54, %v448_v55 }
 0x18f   :  { %2963 = vmatprep.subr.bf16.mxu0 %v4682_v21  ;;  %v212_v21 = vld [vmem:[#allocation5 + $0x298] sm:$0xff] }
 0x190   :  { %3032 = vmatpush1.bf16.msra.mxu1 %v4355_v20  ;;  %v296_v20 = vld [vmem:[#allocation5 + $0x538] sm:$0xff] }
 0x191   :  { %3033 = vmatprep.subr.bf16.mxu1 %v4348_v22  ;;  %v4508_v25 = vcombine.high %v292_v18, %v296_v20  ;;  %v4507_v35 = vcombine.low %v292_v18, %v296_v20 }
 0x192   :  { %2964 = vmatpush2.bf16.msra.mxu0 %v4681_v29  ;;  %v284_v29 = vld [vmem:[#allocation5 + $0x4d8] sm:$0xff] }
 0x193   :  { %2965 = vmatprep.subr.bf16.mxu0 %v4674_v31  ;;  %v208_v31 = vld [vmem:[#allocation5 + $0x278] sm:$0xff] }
 0x194   :  { %3034 = vmatpush1.bf16.msra.mxu1 %v4347_v30  ;;  %v204_v30 = vld [vmem:[#allocation5 + $0x258] sm:$0xff] }
 0x195   :  { %3035 = vmatprep.subr.bf16.mxu1 %v4468_v34  ;;  %v4420_v39 = vcombine.high %v204_v30, %v208_v31  ;;  %v4419_v47 = vcombine.low %v204_v30, %v208_v31  ;;  %v416_v30 = vld [vmem:[#allocation5 + $0x8f8] sm:$0xff] }
 0x196   :  { %2966 = vmatpush2.bf16.msra.mxu0 %v4673_v41  ;;  %v276_v41 = vld [vmem:[#allocation5 + $0x498] sm:$0xff] }
 0x197   :  { %2967 = vmatprep.subr.bf16.mxu0 %v4666_v43  ;;  %v196_v43 = vld [vmem:[#allocation5 + $0x218] sm:$0xff] }
 0x198   :  { %3036 = vmatpush2.bf16.msra.mxu1 %v4467_v42  ;;  %v280_v42 = vld [vmem:[#allocation5 + $0x4b8] sm:$0xff] }
 0x199   :  { %3037 = vmatprep.subr.bf16.mxu1 %v4460_v44  ;;  %v200_v44 = vld [vmem:[#allocation5 + $0x238] sm:$0xff]  ;;  %v4492_v48 = vcombine.high %v276_v41, %v280_v42  ;;  %v4491_v56 = vcombine.low %v276_v41, %v280_v42 }
 0x19a   :  { %2968 = vmatpush2.bf16.msra.mxu0 %v4665_v49  ;;  %v4411_v60 = vcombine.low %v196_v43, %v200_v44  ;;  %v404_v41 = vld [vmem:[#allocation5 + $0x898] sm:$0xff] }
 0x19b   :  { %3060 = vmatprep.subr.bf16.mxu0 %v4532_v52  ;;  %v268_v52 = vld [vmem:[#allocation5 + $0x458] sm:$0xff] }
 0x19c   :  { %3038 = vmatpush2.bf16.msra.mxu1 %v4459_v50  ;;  %v4412_v50 = vcombine.high %v196_v43, %v200_v44  ;;  %v408_v42 = vld [vmem:[#allocation5 + $0x8b8] sm:$0xff] }
 0x19d   :  { %3039 = vmatprep.subr.bf16.mxu1 %v4452_v58  ;;  %v2643_v6 = vpop.f32.mrf.mxu0  ;;  %2970 = vmatmul.mubr.bf16.vlgmr.msra.gmra.mxu0 %v5395_v32  ;;  %v272_v58 = vld [vmem:[#allocation5 + $0x478] sm:$0xff] }
 0x19e   :  { %v2644_v9 = vadd.f32 %v2643_v6, %v5422_v27  ;;  %3061 = vmatpush1.bf16.msra.mxu0 %v4531_v61  ;;  %3092 = vmatprep.mubr.bf16.mxu0 %v5376_v59  ;;  %v216_v27 = vld [vmem:[#allocation5 + $0x2b8] sm:$0xff]  ;;  %v4515_v59 = vcombine.low %v300_v4, %v304_v5  ;;  %v4484_v61 = vcombine.high %v268_v52, %v272_v58 }
 0x19f   :  { %v2645_v12 = vpop.f32.mrf.mxu0  ;;  %3062 = vmatprep.subr.bf16.mxu0 %v4524_v1  ;;  %v4428_v26 = vcombine.high %v212_v21, %v216_v27  ;;  %v260_v1 = vld [vmem:[#allocation5 + $0x418] sm:$0xff]  ;;  %v4483_v6 = vcombine.low %v268_v52, %v272_v58  ;;  %v4619_v58 = vcombine.low %v404_v41, %v408_v42 }
 0x1a0   :  { %3040 = vmatpush2.bf16.msra.mxu1 %v4451_v63  ;;  %v5439_v14 = vadd.f32 %v5426_v53, %v2644_v9  ;;  %v2646_v15 = vadd.f32 %v2645_v12, %v5424_v40  ;;  %v288_v40 = vld [vmem:[#allocation5 + $0x4f8] sm:$0xff]  ;;  %v4660_v63 = vcombine.high %v444_v54, %v448_v55 }
 0x1a1   :  { %3041 = vmatprep.subr.bf16.mxu1 %v4444_v2  ;;  %v2647_v22 = vpop.f32.mrf.mxu0  ;;  %v4500_v36 = vcombine.high %v284_v29, %v288_v40  ;;  %v4499_v46 = vcombine.low %v284_v29, %v288_v40  ;;  %v264_v2 = vld [vmem:[#allocation5 + $0x438] sm:$0xff] }
 0x1a2   :  { %v5443_v23 = vadd.f32 %v5428_v57, %v2646_v15  ;;  %3063 = vmatpush1.bf16.msra.mxu0 %v4523_v10  ;;  %v4427_v57 = vcombine.low %v212_v21, %v216_v27  ;;  %v436_v4 = vld [vmem:[#allocation5 + $0x998] sm:$0xff]  ;;  %v4476_v8 = vcombine.high %v260_v1, %v264_v2  ;;  %v4475_v15 = vcombine.low %v260_v1, %v264_v2 }
 0x1a3   :  { %3064 = vmatprep.subr.bf16.mxu0 %v4516_v13  ;;  %v2648_v53 = vpop.f32.mrf.mxu0  ;;  %v440_v5 = vld [vmem:[#allocation5 + $0x9b8] sm:$0xff] }
 0x1a4   :  { %3042 = vmatpush2.bf16.msra.mxu1 %v4443_v11  ;;  %v4652_v9 = vcombine.high %v436_v4, %v440_v5  ;;  %v380_v10 = vld [vmem:[#allocation5 + $0x7d8] sm:$0xff] }
 0x1a5   :  { %3043 = vmatprep.subr.bf16.mxu1 %v4436_v17  ;;  %v384_v11 = vld [vmem:[#allocation5 + $0x7f8] sm:$0xff]  ;;  %v4651_v17 = vcombine.low %v436_v4, %v440_v5 }
 0x1a6   :  { %3065 = vmatpush1.bf16.msra.mxu0 %v4515_v59  ;;  %v428_v12 = vld [vmem:[#allocation5 + $0x958] sm:$0xff]  ;;  %v4596_v18 = vcombine.high %v380_v10, %v384_v11 }
 0x1a7   :  { %v5445_v34 = vpop.f32.mrf.mxu1  ;;  %3066 = vmatprep.subr.bf16.mxu0 %v4508_v25  ;;  %v432_v13 = vld [vmem:[#allocation5 + $0x978] sm:$0xff] }
 0x1a8   :  { %3044 = vmatpush2.bf16.msra.mxu1 %v4435_v24  ;;  %v4644_v20 = vcombine.high %v428_v12, %v432_v13  ;;  %v372_v21 = vld [vmem:[#allocation5 + $0x798] sm:$0xff]  ;;  %v4595_v24 = vcombine.low %v380_v10, %v384_v11  ;;  %v4643_v25 = vcombine.low %v428_v12, %v432_v13 }
 0x1a9   :  { %v5447_v38 = vpop.f32.mrf.mxu1  ;;  %3045 = vmatprep.subr.bf16.mxu1 %v4428_v26  ;;  %v376_v27 = vld [vmem:[#allocation5 + $0x7b8] sm:$0xff] }
 0x1aa   :  { %3067 = vmatpush1.bf16.msra.mxu0 %v4507_v35  ;;  %v420_v22 = vld [vmem:[#allocation5 + $0x918] sm:$0xff]  ;;  %v4587_v31 = vcombine.low %v372_v21, %v376_v27 }
 0x1ab   :  { %v2729_v45 = vpop.f32.mrf.mxu1  ;;  %3068 = vmatprep.subr.bf16.mxu0 %v4500_v36  ;;  %v424_v59 = vld [vmem:[#allocation5 + $0x938] sm:$0xff] }
 0x1ac   :  { %3046 = vmatpush2.bf16.msra.mxu1 %v4427_v57  ;;  %v4636_v53 = vcombine.high %v420_v22, %v424_v59  ;;  %v364_v26 = vld [vmem:[#allocation5 + $0x758] sm:$0xff]  ;;  %v4635_v35 = vcombine.low %v420_v22, %v424_v59  ;;  %v533_v59 = vsub.s32 2, %v5408_v51 }
 0x1ad   :  { %v2730_v49 = vpop.f32.mrf.mxu1  ;;  %3047 = vmatprep.subr.bf16.mxu1 %v4420_v39  ;;  %v368_v29 = vld [vmem:[#allocation5 + $0x778] sm:$0xff] }
 0x1ae   :  { %3069 = vmatpush1.bf16.msra.mxu0 %v4499_v46  ;;  %v412_v40 = vld [vmem:[#allocation5 + $0x8d8] sm:$0xff]  ;;  %v4579_v43 = vcombine.low %v364_v26, %v368_v29  ;;  %v4620_v46 = vcombine.high %v404_v41, %v408_v42 }
 0x1af   :  { %3070 = vmatprep.subr.bf16.mxu0 %v4492_v48  ;;  %v4628_v57 = vcombine.high %v412_v40, %v416_v30  ;;  %v356_v36 = vld [vmem:[#allocation5 + $0x718] sm:$0xff]  ;;  %v4627_v44 = vcombine.low %v412_v40, %v416_v30  ;;  %v3184_v40 = vmax.f32 %v5443_v23, 0.0  ;;  %v534_v30 = vrot.slane %v5411_v0, %v533_v59 }
 0x1b0   :  { %3048 = vmatpush2.bf16.msra.mxu1 %v4419_v47  ;;  %v360_v39 = vld [vmem:[#allocation5 + $0x738] sm:$0xff] }
 0x1b1   :  { %3049 = vmatprep.subr.bf16.mxu1 %v4412_v50  ;;  %v4572_v45 = vcombine.high %v356_v36, %v360_v39  ;;  %v348_v47 = vld [vmem:[#allocation5 + $0x6d8] sm:$0xff]  ;;  %v4571_v52 = vcombine.low %v356_v36, %v360_v39  ;;  %v4924_v39 = vld [vmem:[#allocation8 + $0x64] ss:$8 sps:$4 sm:$0xff]   ;;  %v3192_v41 = vpack.c.bf16 %v3184_v40, %v3184_v40  ;;  %v2726_v42 = vadd.f32 %v5445_v34, %v534_v30 }
 0x1b2   :  { %3071 = vmatpush1.bf16.msra.mxu0 %v4491_v56  ;;  %v352_v48 = vld [vmem:[#allocation5 + $0x6f8] sm:$0xff] }
 0x1b3   :  { %3072 = vmatprep.subr.bf16.mxu0 %v4484_v61  ;;  %v396_v49 = vld [vmem:[#allocation5 + $0x858] sm:$0xff]  ;;  %v4564_v54 = vcombine.high %v348_v47, %v352_v48  ;;  %v4563_v1 = vcombine.low %v348_v47, %v352_v48  ;;  %v4922_v47 = vld [vmem:[#allocation8 + $0x60] ss:$8 sps:$4 sm:$0xff]  }
 0x1b4   :  { %3050 = vmatpush2.bf16.msra.mxu1 %v4411_v60  ;;  %v400_v50 = vld [vmem:[#allocation5 + $0x878] sm:$0xff] }
 0x1b5   :  { %3101 = vmatprep.subr.bf16.mxu1 %v4660_v63  ;;  %v4612_v55 = vcombine.high %v396_v49, %v400_v50  ;;  %v340_v56 = vld [vmem:[#allocation5 + $0x698] sm:$0xff]  ;;  %v4611_v2 = vcombine.low %v396_v49, %v400_v50 }
 0x1b6   :  { %3073 = vmatpush1.bf16.msra.mxu0 %v4483_v6  ;;  %v344_v60 = vld [vmem:[#allocation5 + $0x6b8] sm:$0xff] }
 0x1b7   :  { %3052 = vmatmul.mubr.bf16.vlgmr.msra.gmra.mxu1 %v5380_v16  ;;  %3074 = vmatprep.subr.bf16.mxu0 %v4476_v8  ;;  %v4588_v16 = vcombine.high %v372_v21, %v376_v27  ;;  %v388_v61 = vld [vmem:[#allocation5 + $0x818] sm:$0xff]  ;;  %v4556_v4 = vcombine.high %v340_v56, %v344_v60  ;;  %v4555_v10 = vcombine.low %v340_v56, %v344_v60  ;;  %v4930_v56 = vld [vmem:[#allocation8 + $0x44] ss:$8 sps:$4 sm:$0xff]  }
 0x1b8   :  { %3102 = vmatpush1.bf16.msra.mxu1 %v4659_v7  ;;  %3133 = vmatprep.mubr.bf16.mxu1 %v5385_v28  ;;  %v4580_v28 = vcombine.high %v364_v26, %v368_v29  ;;  %v392_v63 = vld [vmem:[#allocation5 + $0x838] sm:$0xff] }
 0x1b9   :  { %3103 = vmatprep.subr.bf16.mxu1 %v4652_v9  ;;  %v4604_v5 = vcombine.high %v388_v61, %v392_v63  ;;  %v332_v6 = vld [vmem:[#allocation5 + $0x658] sm:$0xff]  ;;  %v4603_v11 = vcombine.low %v388_v61, %v392_v63 }
 0x1ba   :  { %3075 = vmatpush1.bf16.msra.mxu0 %v4475_v15  ;;  %v336_v7 = vld [vmem:[#allocation5 + $0x678] sm:$0xff] }
 0x1bb   :  { %3076 = vmatprep.subr.bf16.mxu0 %v4596_v18  ;;  %v508_v8 = vld [vmem:[#allocation5 + $0xbd8] sm:$0xff]  ;;  %v4548_v12 = vcombine.high %v332_v6, %v336_v7  ;;  %v4547_v21 = vcombine.low %v332_v6, %v336_v7 }
 0x1bc   :  { %3104 = vmatpush1.bf16.msra.mxu1 %v4651_v17  ;;  %v512_v9 = vld [vmem:[#allocation5 + $0xbf8] sm:$0xff] }
 0x1bd   :  { %3105 = vmatprep.subr.bf16.mxu1 %v4644_v20  ;;  %v4724_v13 = vcombine.high %v508_v8, %v512_v9  ;;  %v324_v15 = vld [vmem:[#allocation5 + $0x618] sm:$0xff]  ;;  %v4723_v27 = vcombine.low %v508_v8, %v512_v9 }
 0x1be   :  { %3077 = vmatpush2.bf16.msra.mxu0 %v4595_v24  ;;  %v328_v17 = vld [vmem:[#allocation5 + $0x638] sm:$0xff] }
 0x1bf   :  { %3078 = vmatprep.subr.bf16.mxu0 %v4588_v16  ;;  %v500_v18 = vld [vmem:[#allocation5 + $0xb98] sm:$0xff]  ;;  %v4540_v22 = vcombine.high %v324_v15, %v328_v17 }
 0x1c0   :  { %3106 = vmatpush1.bf16.msra.mxu1 %v4643_v25  ;;  %v504_v20 = vld [vmem:[#allocation5 + $0xbb8] sm:$0xff] }
 0x1c1   :  { %3107 = vmatprep.subr.bf16.mxu1 %v4636_v53  ;;  %v4716_v24 = vcombine.high %v500_v18, %v504_v20  ;;  %v492_v25 = vld [vmem:[#allocation5 + $0xb58] sm:$0xff]  ;;  %v4539_v53 = vcombine.low %v324_v15, %v328_v17  ;;  %v4715_v26 = vcombine.low %v500_v18, %v504_v20  ;;  %v4936_v20 = vld [vmem:[#allocation8 + $0x24] ss:$8 sps:$4 sm:$0xff]  }
 0x1c2   :  { %3079 = vmatpush2.bf16.msra.mxu0 %v4587_v31  ;;  %v496_v16 = vld [vmem:[#allocation5 + $0xb78] sm:$0xff] }
 0x1c3   :  { %3080 = vmatprep.subr.bf16.mxu0 %v4580_v28  ;;  %v4921_v29 = vld [vmem:[#allocation8 + $0x74] ss:$8 sps:$4 sm:$0xff]   ;;  %v4708_v31 = vcombine.high %v492_v25, %v496_v16  ;;  %v4707_v36 = vcombine.low %v492_v25, %v496_v16  ;;  %v4931_v15 = vld [vmem:[#allocation8 + $0x30] ss:$8 sps:$4 sm:$0xff]   ;;  %v4934_v25 = vld [vmem:[#allocation8 + $0x20] ss:$8 sps:$4 sm:$0xff]  }
 0x1c4   :  { %3108 = vmatpush1.bf16.msra.mxu1 %v4635_v35  ;;  %v484_v35 = vld [vmem:[#allocation5 + $0xb18] sm:$0xff] }
 0x1c5   :  { %3109 = vmatprep.subr.bf16.mxu1 %v4628_v57  ;;  %v488_v28 = vld [vmem:[#allocation5 + $0xb38] sm:$0xff] }
 0x1c6   :  { %3081 = vmatpush2.bf16.msra.mxu0 %v4579_v43  ;;  %v4919_v57 = vld [vmem:[#allocation8 + $0x70] ss:$8 sps:$4 sm:$0xff]   ;;  %v4700_v43 = vcombine.high %v484_v35, %v488_v28  ;;  %v4699_v48 = vcombine.low %v484_v35, %v488_v28  ;;  %v4927_v50 = vld [vmem:[#allocation8 + $0x54] ss:$8 sps:$4 sm:$0xff]  }
 0x1c7   :  { %3082 = vmatprep.subr.bf16.mxu0 %v4572_v45  ;;  %v476_v23 = vld [vmem:[#allocation5 + $0xad8] sm:$0xff] }
 0x1c8   :  { %3110 = vmatpush1.bf16.msra.mxu1 %v4627_v44  ;;  %v480_v45 = vld [vmem:[#allocation5 + $0xaf8] sm:$0xff] }
 0x1c9   :  { %3111 = vmatprep.subr.bf16.mxu1 %v4620_v46  ;;  %v472_v34 = vld [vmem:[#allocation5 + $0xab8] sm:$0xff] }
 0x1ca   :  { %3083 = vmatpush2.bf16.msra.mxu0 %v4571_v52  ;;  %v4692_v52 = vcombine.high %v476_v23, %v480_v45  ;;  %v460_v63 = vld [vmem:[#allocation5 + $0xa58] sm:$0xff] }
 0x1cb   :  { %3084 = vmatprep.subr.bf16.mxu0 %v4564_v54  ;;  %v4933_v8 = vld [vmem:[#allocation8 + $0x34] ss:$8 sps:$4 sm:$0xff]   ;;  %v4937_v35 = vld [vmem:[#allocation8 + $0x10] ss:$8 sps:$4 sm:$0xff]  }
 0x1cc   :  { %3112 = vmatpush1.bf16.msra.mxu1 %v4619_v58  ;;  %v468_v58 = vld [vmem:[#allocation5 + $0xa98] sm:$0xff] }
 0x1cd   :  { %3113 = vmatprep.subr.bf16.mxu1 %v4612_v55  ;;  %v4925_v55 = vld [vmem:[#allocation8 + $0x50] ss:$8 sps:$4 sm:$0xff]   ;;  %v4684_v61 = vcombine.high %v468_v58, %v472_v34  ;;  %v4683_v7 = vcombine.low %v468_v58, %v472_v34  ;;  %v4966_v34 = vld [vmem:[#allocation8 + $0xc4] ss:$8 sps:$4 sm:$0xff]  }
 0x1ce   :  { %3085 = vmatpush2.bf16.msra.mxu0 %v4563_v1  ;;  %v464_v1 = vld [vmem:[#allocation5 + $0xa78] sm:$0xff] }
 0x1cf   :  { %3086 = vmatprep.subr.bf16.mxu0 %v4556_v4  ;;  %v4928_v4 = vld [vmem:[#allocation8 + $0x40] ss:$8 sps:$4 sm:$0xff]   ;;  %v4675_v18 = vcombine.low %v460_v63, %v464_v1  ;;  %v520_v59 = vld [vmem:[#allocation5 + $0xc38] sm:$0xff] }
 0x1d0   :  { %3114 = vmatpush1.bf16.msra.mxu1 %v4611_v2  ;;  %v4955_v58 = vld [vmem:[#allocation8 + $0x150] ss:$8 sps:$4 sm:$0xff]  }
 0x1d1   :  { %3115 = vmatprep.subr.bf16.mxu1 %v4604_v5  ;;  %v537_v5 = vsub.s32 3, %v5408_v51 }
 0x1d2   :  { %3087 = vmatpush2.bf16.msra.mxu0 %v4555_v10  ;;  %v4676_v10 = vcombine.high %v460_v63, %v464_v1  ;;  %v4978_v63 = vld [vmem:[#allocation8 + $0xa4] ss:$8 sps:$4 sm:$0xff]  }
 0x1d3   :  { %3088 = vmatprep.subr.bf16.mxu0 %v4548_v12  ;;  %v456_v12 = vld [vmem:[#allocation5 + $0xa38] sm:$0xff]  ;;  %v538_v17 = vrot.slane %v5411_v0, %v537_v5  ;;  %v4975_v1 = vld [vmem:[#allocation8 + $0x124] ss:$8 sps:$4 sm:$0xff]  }
 0x1d4   :  { %3116 = vmatpush1.bf16.msra.mxu1 %v4603_v11  ;;  %v452_v11 = vld [vmem:[#allocation5 + $0xa18] sm:$0xff] }
 0x1d5   :  { %3117 = vmatprep.subr.bf16.mxu1 %v4724_v13  ;;  %v2728_v16 = vadd.f32 %v5447_v38, %v538_v17  ;;  %v4939_v0 = vld [vmem:[#allocation8 + $0x14] ss:$8 sps:$4 sm:$0xff]   ;;  %v4942_v38 = vld [vmem:[#allocation8 + $0x4] ss:$8 sps:$4 sm:$0xff]  }
 0x1d6   :  { %3089 = vmatpush2.bf16.msra.mxu0 %v4547_v21  ;;  %v4984_v5 = vld [vmem:[#allocation8 + $0x94] ss:$8 sps:$4 sm:$0xff]  }
 0x1d7   :  { %3090 = vmatprep.subr.bf16.mxu0 %v4540_v22  ;;  %v516_v22 = vld [vmem:[#allocation5 + $0xc18] sm:$0xff] }
 0x1d8   :  { %3118 = vmatpush2.bf16.msra.mxu1 %v4723_v27  ;;  %v4668_v27 = vcombine.high %v452_v11, %v456_v12  ;;  %v4732_v40 = vcombine.high %v516_v22, %v520_v59  ;;  %v4993_v17 = vld [vmem:[#allocation8 + $0x1f4] ss:$8 sps:$4 sm:$0xff]  }
 0x1d9   :  { %3119 = vmatprep.subr.bf16.mxu1 %v4716_v24 }
 0x1da   :  { %3091 = vmatpush2.bf16.msra.mxu0 %v4539_v53 }
 0x1db   :  { %3979 = vmatprep.subr.bf16.mxu0 %v4921_v29 }
 0x1dc   :  { %3120 = vmatpush2.bf16.msra.mxu1 %v4715_v26  ;;  %v4667_v26 = vcombine.low %v452_v11, %v456_v12  ;;  %v4988_v11 = vld [vmem:[#allocation8 + $0x80] ss:$8 sps:$4 sm:$0xff]   ;;  %v3183_v12 = vmax.f32 %v5439_v14, 0.0 }
 0x1dd   :  { %3121 = vmatprep.subr.bf16.mxu1 %v4708_v31  ;;  %v2766_v44 = vpop.f32.mrf.mxu0  ;;  %3093 = vmatmul.mubr.bf16.vlgmr.msra.gmra.mxu0 %v5382_v19  ;;  %v4691_v19 = vcombine.low %v476_v23, %v480_v45  ;;  %v4946_v23 = vld [vmem:[#allocation8 + $0xf0] ss:$8 sps:$4 sm:$0xff]   ;;  %v5012_v14 = vld [vmem:[#allocation8 + $0x260] ss:$8 sps:$4 sm:$0xff]  }
 0x1de   :  { %v2767_v46 = vadd.f32 %v2766_v44, %v2726_v42  ;;  %3980 = vmatpush1.bf16.msra.mxu0 %v4919_v57  ;;  %4011 = vmatprep.mubr.bf16.mxu0 %v3192_v41  ;;  %v4731_v57 = vcombine.low %v516_v22, %v520_v59  ;;  %v4940_v42 = vld [vmem:[#allocation8] ss:$8 sps:$4 sm:$0xff]   ;;  %v4943_v45 = vld [vmem:[#allocation8 + $0x170] ss:$8 sps:$4 sm:$0xff]   ;;  %v4996_v22 = vld [vmem:[#allocation8 + $0x1e4] ss:$8 sps:$4 sm:$0xff]  }
 0x1df   :  { %v2768_v49 = vpop.f32.mrf.mxu0  ;;  %3981 = vmatprep.subr.bf16.mxu0 %v4924_v39  ;;  %v4945_v39 = vld [vmem:[#allocation8 + $0x174] ss:$8 sps:$4 sm:$0xff]  }
 0x1e0   :  { %3122 = vmatpush2.bf16.msra.mxu1 %v4707_v36  ;;  %v2769_v30 = vadd.f32 %v2768_v49, %v2728_v16  ;;  %v4949_v49 = vld [vmem:[#allocation8 + $0x160] ss:$8 sps:$4 sm:$0xff]   ;;  %v5020_v16 = vld [vmem:[#allocation8 + $0x254] ss:$8 sps:$4 sm:$0xff]  }
 0x1e1   :  { %3123 = vmatprep.subr.bf16.mxu1 %v4700_v43  ;;  %v2770_v54 = vpop.f32.mrf.mxu0  ;;  %v4948_v43 = vld [vmem:[#allocation8 + $0xf4] ss:$8 sps:$4 sm:$0xff]  }
 0x1e2   :  { %3982 = vmatpush1.bf16.msra.mxu0 %v4922_v47  ;;  %v4954_v47 = vld [vmem:[#allocation8 + $0xe4] ss:$8 sps:$4 sm:$0xff]  }
 0x1e3   :  { %3983 = vmatprep.subr.bf16.mxu0 %v4927_v50  ;;  %v2771_v60 = vpop.f32.mrf.mxu0  ;;  %v4957_v50 = vld [vmem:[#allocation8 + $0x154] ss:$8 sps:$4 sm:$0xff]   ;;  %v4963_v54 = vld [vmem:[#allocation8 + $0x144] ss:$8 sps:$4 sm:$0xff]  }
 0x1e4   :  { %3124 = vmatpush2.bf16.msra.mxu1 %v4699_v48  ;;  %v4970_v60 = vld [vmem:[#allocation8 + $0xb0] ss:$8 sps:$4 sm:$0xff]  }
 0x1e5   :  { %3125 = vmatprep.subr.bf16.mxu1 %v4692_v52  ;;  %v4958_v52 = vld [vmem:[#allocation8 + $0xd0] ss:$8 sps:$4 sm:$0xff]  }
 0x1e6   :  { %3984 = vmatpush1.bf16.msra.mxu0 %v4925_v55  ;;  %v4964_v55 = vld [vmem:[#allocation8 + $0xc0] ss:$8 sps:$4 sm:$0xff]  }
 0x1e7   :  { %v2807_v2 = vpop.f32.mrf.mxu1  ;;  %3985 = vmatprep.subr.bf16.mxu0 %v4930_v56  ;;  %v4969_v56 = vld [vmem:[#allocation8 + $0x134] ss:$8 sps:$4 sm:$0xff]  }
 0x1e8   :  { %3126 = vmatpush2.bf16.msra.mxu1 %v4691_v19  ;;  %v2808_v6 = vadd.f32 %v2807_v2, %v2767_v46  ;;  %v4951_v46 = vld [vmem:[#allocation8 + $0x164] ss:$8 sps:$4 sm:$0xff]   ;;  %v4972_v19 = vld [vmem:[#allocation8 + $0xb4] ss:$8 sps:$4 sm:$0xff]   ;;  %v4976_v2 = vld [vmem:[#allocation8 + $0xa0] ss:$8 sps:$4 sm:$0xff]  }
 0x1e9   :  { %v2809_v9 = vpop.f32.mrf.mxu1  ;;  %3127 = vmatprep.subr.bf16.mxu1 %v4684_v61  ;;  %v4967_v61 = vld [vmem:[#allocation8 + $0x130] ss:$8 sps:$4 sm:$0xff]  }
 0x1ea   :  { %3986 = vmatpush1.bf16.msra.mxu0 %v4928_v4  ;;  %v2810_v28 = vadd.f32 %v2809_v9, %v2769_v30  ;;  %v4973_v4 = vld [vmem:[#allocation8 + $0x120] ss:$8 sps:$4 sm:$0xff]   ;;  %v4990_v9 = vld [vmem:[#allocation8 + $0x84] ss:$8 sps:$4 sm:$0xff]  }
 0x1eb   :  { %v2811_v13 = vpop.f32.mrf.mxu1  ;;  %3987 = vmatprep.subr.bf16.mxu0 %v4933_v8  ;;  %v4979_v8 = vld [vmem:[#allocation8 + $0x110] ss:$8 sps:$4 sm:$0xff]   ;;  %v5026_v30 = vld [vmem:[#allocation8 + $0x244] ss:$8 sps:$4 sm:$0xff]  }
 0x1ec   :  { %3128 = vmatpush2.bf16.msra.mxu1 %v4683_v7  ;;  %v4982_v7 = vld [vmem:[#allocation8 + $0x90] ss:$8 sps:$4 sm:$0xff]   ;;  %v4985_v13 = vld [vmem:[#allocation8 + $0x100] ss:$8 sps:$4 sm:$0xff]  }
 0x1ed   :  { %v2812_v21 = vpop.f32.mrf.mxu1  ;;  %3129 = vmatprep.subr.bf16.mxu1 %v4676_v10  ;;  %v4987_v10 = vld [vmem:[#allocation8 + $0x104] ss:$8 sps:$4 sm:$0xff]  }
 0x1ee   :  { %3988 = vmatpush1.bf16.msra.mxu0 %v4931_v15  ;;  %v5008_v15 = vld [vmem:[#allocation8 + $0x274] ss:$8 sps:$4 sm:$0xff]   ;;  %v4991_v21 = vld [vmem:[#allocation8 + $0x1f0] ss:$8 sps:$4 sm:$0xff]  }
 0x1ef   :  { %v2848_v24 = vpop.f32.mrf.mxu1  ;;  %3989 = vmatprep.subr.bf16.mxu0 %v4936_v20  ;;  %v3191_v20 = vpack.c.bf16 %v3183_v12, %v3183_v12  ;;  %v5069_v12 = vld [vmem:[#allocation8 + $0x350] ss:$8 sps:$4 sm:$0xff]  }
 0x1f0   :  { %3130 = vmatpush2.bf16.msra.mxu1 %v4675_v18  ;;  %v5459_v53 = vadd.f32 %v2848_v24, %v2808_v6  ;;  %v4981_v6 = vld [vmem:[#allocation8 + $0x114] ss:$8 sps:$4 sm:$0xff]   ;;  %v5006_v18 = vld [vmem:[#allocation8 + $0x270] ss:$8 sps:$4 sm:$0xff]   ;;  %v4994_v24 = vld [vmem:[#allocation8 + $0x1e0] ss:$8 sps:$4 sm:$0xff]  }
 0x1f1   :  { %v2850_v29 = vpop.f32.mrf.mxu1  ;;  %3131 = vmatprep.subr.bf16.mxu1 %v4668_v27  ;;  %v5014_v27 = vld [vmem:[#allocation8 + $0x264] ss:$8 sps:$4 sm:$0xff]  }
 0x1f2   :  { %3990 = vmatpush1.bf16.msra.mxu0 %v4934_v25  ;;  %v2851_v41 = vadd.f32 %v2850_v29, %v2810_v28  ;;  %v5018_v29 = vld [vmem:[#allocation8 + $0x250] ss:$8 sps:$4 sm:$0xff]   ;;  %v5024_v28 = vld [vmem:[#allocation8 + $0x240] ss:$8 sps:$4 sm:$0xff]  }
 0x1f3   :  { %v2852_v31 = vpop.f32.mrf.mxu1  ;;  %3991 = vmatprep.subr.bf16.mxu0 %v4939_v0 }
 0x1f4   :  { %3132 = vmatpush2.bf16.msra.mxu1 %v4667_v26  ;;  %v3186_v44 = vmax.f32 %v2851_v41, 0.0  ;;  %v4999_v26 = vld [vmem:[#allocation8 + $0x1d4] ss:$8 sps:$4 sm:$0xff]   ;;  %v5003_v41 = vld [vmem:[#allocation8 + $0x1b0] ss:$8 sps:$4 sm:$0xff]  }
 0x1f5   :  { %v2853_v36 = vpop.f32.mrf.mxu1  ;;  %3156 = vmatprep.subr.bf16.mxu1 %v4732_v40  ;;  %v4997_v40 = vld [vmem:[#allocation8 + $0x1d0] ss:$8 sps:$4 sm:$0xff]  }
 0x1f6   :  { %3992 = vmatpush1.bf16.msra.mxu0 %v4937_v35  ;;  %v3194_v48 = vpack.c.bf16 %v3186_v44, %v3186_v44  ;;  %v5002_v35 = vld [vmem:[#allocation8 + $0x1c4] ss:$8 sps:$4 sm:$0xff]   ;;  %v5029_v36 = vld [vmem:[#allocation8 + $0x234] ss:$8 sps:$4 sm:$0xff]  }
 0x1f7   :  { %3134 = vmatmul.mubr.bf16.vlgmr.msra.gmra.mxu1 %v5395_v32  ;;  %3993 = vmatprep.subr.bf16.mxu0 %v4942_v38  ;;  %v4952_v32 = vld [vmem:[#allocation8 + $0xe0] ss:$8 sps:$4 sm:$0xff]   ;;  %v5005_v38 = vld [vmem:[#allocation8 + $0x1b4] ss:$8 sps:$4 sm:$0xff]  }
 0x1f8   :  { %3157 = vmatpush1.bf16.msra.mxu1 %v4731_v57  ;;  %3174 = vmatprep.mubr.bf16.mxu1 %v5311_v33  ;;  %v4960_v33 = vld [vmem:[#allocation8 + $0xd4] ss:$8 sps:$4 sm:$0xff]   ;;  %v5000_v57 = vld [vmem:[#allocation8 + $0x1c0] ss:$8 sps:$4 sm:$0xff]  }
 0x1f9   :  { %4020 = vmatprep.subr.bf16.mxu1 %v4945_v39  ;;  %v5027_v39 = vld [vmem:[#allocation8 + $0x230] ss:$8 sps:$4 sm:$0xff]  }
 0x1fa   :  { %3994 = vmatpush1.bf16.msra.mxu0 %v4940_v42  ;;  %v5032_v42 = vld [vmem:[#allocation8 + $0x224] ss:$8 sps:$4 sm:$0xff]  }
 0x1fb   :  { %3995 = vmatprep.subr.bf16.mxu0 %v4948_v43  ;;  %v5011_v43 = vld [vmem:[#allocation8 + $0x1a4] ss:$8 sps:$4 sm:$0xff]  }
 0x1fe   :  { %3996 = vmatpush2.bf16.msra.mxu0 %v4946_v23  ;;  %v5030_v23 = vld [vmem:[#allocation8 + $0x220] ss:$8 sps:$4 sm:$0xff]  }
 0x1ff   :  { %4736 = vmatmul.mubr.msk.bf16.vlgmr.msra.gmra.mxu1 %vm2523_vm0, %v5390_v37  ;;  %3997 = vmatprep.subr.bf16.mxu0 %v4954_v47  ;;  %v4961_v37 = vld [vmem:[#allocation8 + $0x140] ss:$8 sps:$4 sm:$0xff]  }
 0x200   :  { %4021 = vmatpush1.bf16.msra.mxu1 %v4943_v45  ;;  %4052 = vmatprep.mubr.bf16.mxu1 %v3194_v48  ;;  %v5009_v45 = vld [vmem:[#allocation8 + $0x1a0] ss:$8 sps:$4 sm:$0xff]   ;;  %v5017_v48 = vld [vmem:[#allocation8 + $0x194] ss:$8 sps:$4 sm:$0xff]  }
 0x201   :  { %4022 = vmatprep.subr.bf16.mxu1 %v4951_v46  ;;  %v5035_v46 = vld [vmem:[#allocation8 + $0x214] ss:$8 sps:$4 sm:$0xff]  }
 0x202   :  { %3998 = vmatpush2.bf16.msra.mxu0 %v4952_v32 }
 0x203   :  { %3999 = vmatprep.subr.bf16.mxu0 %v4960_v33  ;;  %v5015_v33 = vld [vmem:[#allocation8 + $0x190] ss:$8 sps:$4 sm:$0xff]  }
 0x204   :  { %4023 = vmatpush1.bf16.msra.mxu1 %v4949_v49  ;;  %v5033_v49 = vld [vmem:[#allocation8 + $0x210] ss:$8 sps:$4 sm:$0xff]  }
 0x205   :  { %4024 = vmatprep.subr.bf16.mxu1 %v4957_v50  ;;  %v5038_v50 = vld [vmem:[#allocation8 + $0x204] ss:$8 sps:$4 sm:$0xff]  }
 0x206   :  { %4000 = vmatpush2.bf16.msra.mxu0 %v4958_v52 }
 0x207   :  { %4001 = vmatprep.subr.bf16.mxu0 %v4966_v34 }
 0x208   :  { %4025 = vmatpush1.bf16.msra.mxu1 %v4955_v58  ;;  %v5023_v58 = vld [vmem:[#allocation8 + $0x184] ss:$8 sps:$4 sm:$0xff]  }
 0x209   :  { %4026 = vmatprep.subr.bf16.mxu1 %v4963_v54  ;;  %v5036_v54 = vld [vmem:[#allocation8 + $0x200] ss:$8 sps:$4 sm:$0xff]  }
 0x20a   :  { %4002 = vmatpush2.bf16.msra.mxu0 %v4964_v55  ;;  %v5021_v55 = vld [vmem:[#allocation8 + $0x180] ss:$8 sps:$4 sm:$0xff]  }
 0x20b   :  { %4003 = vmatprep.subr.bf16.mxu0 %v4972_v19  ;;  %v3185_v19 = vmax.f32 %v5459_v53, 0.0  ;;  %v5047_v53 = vld [vmem:[#allocation8 + $0x2d4] ss:$8 sps:$4 sm:$0xff]  }
 0x20c   :  { %4027 = vmatpush1.bf16.msra.mxu1 %v4961_v37  ;;  %v5041_v37 = vld [vmem:[#allocation8 + $0x2f4] ss:$8 sps:$4 sm:$0xff]  }
 0x20d   :  { %4028 = vmatprep.subr.bf16.mxu1 %v4969_v56 }
 0x20e   :  { %4004 = vmatpush2.bf16.msra.mxu0 %v4970_v60  ;;  %v5065_v60 = vld [vmem:[#allocation8 + $0x374] ss:$8 sps:$4 sm:$0xff]  }
 0x20f   :  { %4005 = vmatprep.subr.bf16.mxu0 %v4978_v63  ;;  %v5039_v63 = vld [vmem:[#allocation8 + $0x2f0] ss:$8 sps:$4 sm:$0xff]  }
 0x210   :  { %4029 = vmatpush1.bf16.msra.mxu1 %v4967_v61 }
 0x211   :  { %4030 = vmatprep.subr.bf16.mxu1 %v4975_v1  ;;  %v5044_v1 = vld [vmem:[#allocation8 + $0x2e4] ss:$8 sps:$4 sm:$0xff]  }
 0x212   :  { %4006 = vmatpush2.bf16.msra.mxu0 %v4976_v2  ;;  %v5063_v2 = vld [vmem:[#allocation8 + $0x370] ss:$8 sps:$4 sm:$0xff]  }
 0x213   :  { %4007 = vmatprep.subr.bf16.mxu0 %v4984_v5 }
 0x214   :  { %4031 = vmatpush1.bf16.msra.mxu1 %v4973_v4  ;;  %v3193_v4 = vpack.c.bf16 %v3185_v19, %v3185_v19 }
 0x215   :  { %4032 = vmatprep.subr.bf16.mxu1 %v4981_v6  ;;  %v5068_v6 = vld [vmem:[#allocation8 + $0x364] ss:$8 sps:$4 sm:$0xff]  }
 0x216   :  { %4008 = vmatpush2.bf16.msra.mxu0 %v4982_v7  ;;  %v5042_v7 = vld [vmem:[#allocation8 + $0x2e0] ss:$8 sps:$4 sm:$0xff]  }
 0x217   :  { %4009 = vmatprep.subr.bf16.mxu0 %v4990_v9  ;;  %v5071_v9 = vld [vmem:[#allocation8 + $0x354] ss:$8 sps:$4 sm:$0xff]  }
 0x218   :  { %4033 = vmatpush1.bf16.msra.mxu1 %v4979_v8  ;;  %v5066_v8 = vld [vmem:[#allocation8 + $0x360] ss:$8 sps:$4 sm:$0xff]  }
 0x219   :  { %4034 = vmatprep.subr.bf16.mxu1 %v4987_v10  ;;  %v5045_v10 = vld [vmem:[#allocation8 + $0x2d0] ss:$8 sps:$4 sm:$0xff]  }
 0x21a   :  { %4010 = vmatpush2.bf16.msra.mxu0 %v4988_v11  ;;  %v5050_v11 = vld [vmem:[#allocation8 + $0x2c4] ss:$8 sps:$4 sm:$0xff]  }
 0x21b   :  { %4061 = vmatprep.subr.bf16.mxu0 %v5008_v15  ;;  %v5048_v15 = vld [vmem:[#allocation8 + $0x2c0] ss:$8 sps:$4 sm:$0xff]  }
 0x21c   :  { %4035 = vmatpush1.bf16.msra.mxu1 %v4985_v13  ;;  %v5074_v13 = vld [vmem:[#allocation8 + $0x344] ss:$8 sps:$4 sm:$0xff]  }
 0x21d   :  { %4036 = vmatprep.subr.bf16.mxu1 %v4993_v17  ;;  %4012 = vmatmul.mubr.bf16.vlgmr.msra.gmra.mxu0 %v3191_v20  ;;  %v5466_v59 = vpop.f32.mrf.mxu0  ;;  %v5053_v17 = vld [vmem:[#allocation8 + $0x2b4] ss:$8 sps:$4 sm:$0xff]  }
 0x21e   :  { %4062 = vmatpush1.bf16.msra.mxu0 %v5006_v18  ;;  %v5072_v18 = vld [vmem:[#allocation8 + $0x340] ss:$8 sps:$4 sm:$0xff]   ;;  %v5077_v20 = vld [vmem:[#allocation8 + $0x334] ss:$8 sps:$4 sm:$0xff]  }
 0x21f   :  { %v5468_v25 = vpop.f32.mrf.mxu0  ;;  %4063 = vmatprep.subr.bf16.mxu0 %v5014_v27  ;;  %v5056_v27 = vld [vmem:[#allocation8 + $0x2a4] ss:$8 sps:$4 sm:$0xff]  }
 0x220   :  { %4037 = vmatpush2.bf16.msra.mxu1 %v4991_v21  ;;  %v5051_v21 = vld [vmem:[#allocation8 + $0x2b0] ss:$8 sps:$4 sm:$0xff]  }
 0x221   :  { %4038 = vmatprep.subr.bf16.mxu1 %v4996_v22  ;;  %v2893_v0 = vpop.f32.mrf.mxu0  ;;  %v5075_v22 = vld [vmem:[#allocation8 + $0x330] ss:$8 sps:$4 sm:$0xff]  }
 0x222   :  { %4064 = vmatpush1.bf16.msra.mxu0 %v5012_v14  ;;  %v5080_v14 = vld [vmem:[#allocation8 + $0x324] ss:$8 sps:$4 sm:$0xff]   ;;  %v541_v0 = vsub.s32 4, %v5408_v51 }
 0x223   :  { %4065 = vmatprep.subr.bf16.mxu0 %v5020_v16  ;;  %v2894_v31 = vpop.f32.mrf.mxu0  ;;  %v5059_v16 = vld [vmem:[#allocation8 + $0x294] ss:$8 sps:$4 sm:$0xff]  }
 0x224   :  { %4039 = vmatpush2.bf16.msra.mxu1 %v4994_v24  ;;  %v5054_v24 = vld [vmem:[#allocation8 + $0x2a0] ss:$8 sps:$4 sm:$0xff]   ;;  %v5062_v31 = vld [vmem:[#allocation8 + $0x284] ss:$8 sps:$4 sm:$0xff]  }
 0x225   :  { %4040 = vmatprep.subr.bf16.mxu1 %v4999_v26  ;;  %v5078_v26 = vld [vmem:[#allocation8 + $0x320] ss:$8 sps:$4 sm:$0xff]  }
 0x226   :  { %4066 = vmatpush1.bf16.msra.mxu0 %v5018_v29  ;;  %v5083_v29 = vld [vmem:[#allocation8 + $0x314] ss:$8 sps:$4 sm:$0xff]  }
 0x227   :  { %4067 = vmatprep.subr.bf16.mxu0 %v5026_v30  ;;  %v5057_v30 = vld [vmem:[#allocation8 + $0x290] ss:$8 sps:$4 sm:$0xff]  }
 0x228   :  { %4041 = vmatpush2.bf16.msra.mxu1 %v4997_v40  ;;  %v545_v40 = vsub.s32 5, %v5408_v51 }
 0x229   :  { %4042 = vmatprep.subr.bf16.mxu1 %v5002_v35  ;;  %v5081_v35 = vld [vmem:[#allocation8 + $0x310] ss:$8 sps:$4 sm:$0xff]  }
 0x22a   :  { %4068 = vmatpush1.bf16.msra.mxu0 %v5024_v28  ;;  %v5481_v28 = vld [vmem:[#allocation7] sm:$0xff] }
 0x22b   :  { %4069 = vmatprep.subr.bf16.mxu0 %v5029_v36  ;;  %v5086_v36 = vld [vmem:[#allocation8 + $0x304] ss:$8 sps:$4 sm:$0xff]  }
 0x22c   :  { %4043 = vmatpush2.bf16.msra.mxu1 %v5000_v57  ;;  %v542_v57 = vrot.slane %v5481_v28, %v541_v0  ;;  %v5116_v0 = vld [vmem:[#allocation11 + $0x28] sm:$0xff]  }
 0x22d   :  { %4044 = vmatprep.subr.bf16.mxu1 %v5005_v38  ;;  %v546_v38 = vrot.slane %v5481_v28, %v545_v40  ;;  %v5117_v40 = vld [vmem:[#allocation11 + $0x60] sm:$0xff]  }
 0x22e   :  { %4070 = vmatpush1.bf16.msra.mxu0 %v5027_v39  ;;  %v5060_v39 = vld [vmem:[#allocation8 + $0x280] ss:$8 sps:$4 sm:$0xff]  }
 0x22f   :  { %v5470_v44 = vpop.f32.mrf.mxu1  ;;  %4071 = vmatprep.subr.bf16.mxu0 %v5032_v42  ;;  %v2890_v42 = vadd.f32 %v5466_v59, %v542_v57  ;;  %v5118_v57 = vld [vmem:[#allocation11 + $0x20] sm:$0xff]  }
 0x230   :  { %4045 = vmatpush2.bf16.msra.mxu1 %v5003_v41  ;;  %v5084_v41 = vld [vmem:[#allocation8 + $0x300] ss:$8 sps:$4 sm:$0xff]  }
 0x231   :  { %v5472_v47 = vpop.f32.mrf.mxu1  ;;  %4046 = vmatprep.subr.bf16.mxu1 %v5011_v43  ;;  %v5089_v43 = vld [vmem:[#allocation8 + $0x3f4] ss:$8 sps:$4 sm:$0xff]  }
 0x232   :  { %4072 = vmatpush1.bf16.msra.mxu0 %v5030_v23  ;;  %v2892_v23 = vadd.f32 %v5468_v25, %v546_v38 }
 0x233   :  { %v2934_v32 = vpop.f32.mrf.mxu1  ;;  %4073 = vmatprep.subr.bf16.mxu0 %v5035_v46  ;;  %v2931_v46 = vadd.f32 %v5470_v44, %v2890_v42  ;;  %v5093_v44 = vld [vmem:[#allocation8 + $0x3d0] ss:$8 sps:$4 sm:$0xff]  }
 0x234   :  { %4047 = vmatpush2.bf16.msra.mxu1 %v5009_v45  ;;  %v5087_v45 = vld [vmem:[#allocation8 + $0x3f0] ss:$8 sps:$4 sm:$0xff]  }
 0x235   :  { %v2935_v52 = vpop.f32.mrf.mxu1  ;;  %4048 = vmatprep.subr.bf16.mxu1 %v5017_v48  ;;  %v5092_v48 = vld [vmem:[#allocation8 + $0x3e4] ss:$8 sps:$4 sm:$0xff]  }
 0x236   :  { %4074 = vmatpush1.bf16.msra.mxu0 %v5033_v49  ;;  %v2933_v49 = vadd.f32 %v5472_v47, %v2892_v23  ;;  %v5090_v52 = vld [vmem:[#allocation8 + $0x3e0] ss:$8 sps:$4 sm:$0xff]  }
 0x237   :  { %v5474_v34 = vpop.f32.mrf.mxu1  ;;  %4075 = vmatprep.subr.bf16.mxu0 %v5038_v50 }
 0x238   :  { %4049 = vmatpush2.bf16.msra.mxu1 %v5015_v33 }
 0x239   :  { %v5477_v56 = vpop.f32.mrf.mxu1  ;;  %4050 = vmatprep.subr.bf16.mxu1 %v5023_v58 }
 0x23a   :  { %4076 = vmatpush1.bf16.msra.mxu0 %v5036_v54  ;;  %v5095_v54 = vld [vmem:[#allocation8 + $0x3d4] ss:$8 sps:$4 sm:$0xff]  }
 0x23b   :  { %v3016_v61 = vpop.f32.mrf.mxu1  ;;  %4077 = vmatprep.subr.bf16.mxu0 %v5041_v37 }
 0x23c   :  { %4051 = vmatpush2.bf16.msra.mxu1 %v5021_v55  ;;  %v5098_v61 = vld [vmem:[#allocation8 + $0x3c4] ss:$8 sps:$4 sm:$0xff]  }
 0x23d   :  { %v3017_v5 = vpop.f32.mrf.mxu1  ;;  %4102 = vmatprep.subr.bf16.mxu1 %v5065_v60 }
 0x23e   :  { %4078 = vmatpush2.bf16.msra.mxu0 %v5039_v63  ;;  %v5107_v5 = vld [vmem:[#allocation8 + $0x394] ss:$8 sps:$4 sm:$0xff]  }
 0x23f   :  { %4053 = vmatmul.mubr.bf16.vlgmr.msra.gmra.mxu1 %v3193_v4  ;;  %4079 = vmatprep.subr.bf16.mxu0 %v5044_v1  ;;  %v5096_v1 = vld [vmem:[#allocation8 + $0x3c0] ss:$8 sps:$4 sm:$0xff]   ;;  %v5104_v4 = vld [vmem:[#allocation8 + $0x3a4] ss:$8 sps:$4 sm:$0xff]  }
 0x240   :  { %4103 = vmatpush1.bf16.msra.mxu1 %v5063_v2  ;;  %v5099_v2 = vld [vmem:[#allocation8 + $0x3b0] ss:$8 sps:$4 sm:$0xff]  }
 0x241   :  { %4104 = vmatprep.subr.bf16.mxu1 %v5068_v6  ;;  %v5105_v6 = vld [vmem:[#allocation8 + $0x390] ss:$8 sps:$4 sm:$0xff]  }
 0x242   :  { %4080 = vmatpush2.bf16.msra.mxu0 %v5042_v7  ;;  %v5110_v7 = vld [vmem:[#allocation8 + $0x384] ss:$8 sps:$4 sm:$0xff]  }
 0x243   :  { %4081 = vmatprep.subr.bf16.mxu0 %v5047_v53 }
 0x244   :  { %4105 = vmatpush1.bf16.msra.mxu1 %v5066_v8  ;;  %v5108_v8 = vld [vmem:[#allocation8 + $0x380] ss:$8 sps:$4 sm:$0xff]  }
 0x245   :  { %4106 = vmatprep.subr.bf16.mxu1 %v5071_v9 }
 0x246   :  { %4082 = vmatpush2.bf16.msra.mxu0 %v5045_v10 }
 0x247   :  { %4083 = vmatprep.subr.bf16.mxu0 %v5050_v11 }
 0x248   :  { %4107 = vmatpush1.bf16.msra.mxu1 %v5069_v12 }
 0x249   :  { %4108 = vmatprep.subr.bf16.mxu1 %v5074_v13 }
 0x24a   :  { %4084 = vmatpush2.bf16.msra.mxu0 %v5048_v15 }
 0x24b   :  { %4085 = vmatprep.subr.bf16.mxu0 %v5053_v17 }
 0x24c   :  { %4109 = vmatpush1.bf16.msra.mxu1 %v5072_v18  ;;  %v5111_v18 = vld [vmem:[#allocation11 + $0x78] sm:$0xff]  }
 0x24d   :  { %4110 = vmatprep.subr.bf16.mxu1 %v5077_v20  ;;  %v5112_v20 = vld [vmem:[#allocation11 + $0x38] sm:$0xff]  }
 0x24e   :  { %4086 = vmatpush2.bf16.msra.mxu0 %v5051_v21  ;;  %v5113_v21 = vld [vmem:[#allocation11 + $0x70] sm:$0xff]  }
 0x24f   :  { %4087 = vmatprep.subr.bf16.mxu0 %v5056_v27  ;;  %v549_v27 = vsub.s32 6, %v5408_v51 }
 0x250   :  { %4111 = vmatpush1.bf16.msra.mxu1 %v5075_v22  ;;  %v5114_v22 = vld [vmem:[#allocation11 + $0x30] sm:$0xff]  }
 0x251   :  { %4112 = vmatprep.subr.bf16.mxu1 %v5080_v14  ;;  %v553_v14 = vsub.s32 7, %v5408_v51 }
 0x252   :  { %4088 = vmatpush2.bf16.msra.mxu0 %v5054_v24  ;;  %v5115_v24 = vld [vmem:[#allocation11 + $0x68] sm:$0xff]  }
 0x253   :  { %4089 = vmatprep.subr.bf16.mxu0 %v5059_v16  ;;  %v550_v16 = vrot.slane %v5481_v28, %v549_v27 }
 0x254   :  { %4113 = vmatpush1.bf16.msra.mxu1 %v5078_v26 }
 0x255   :  { %4114 = vmatprep.subr.bf16.mxu1 %v5083_v29  ;;  %v554_v29 = vrot.slane %v5481_v28, %v553_v14  ;;  %v5121_v28 = vld [vmem:[#allocation11 + $0x50] sm:$0xff]  }
 0x256   :  { %4090 = vmatpush2.bf16.msra.mxu0 %v5057_v30 }
 0x257   :  { %4091 = vmatprep.subr.bf16.mxu0 %v5062_v31 }
 0x258   :  { %4115 = vmatpush1.bf16.msra.mxu1 %v5081_v35 }
 0x259   :  { %4116 = vmatprep.subr.bf16.mxu1 %v5086_v36 }
 0x25a   :  { %4092 = vmatpush2.bf16.msra.mxu0 %v5060_v39  ;;  %v5119_v39 = vld [vmem:[#allocation11 + $0x58] sm:$0xff]  }
 0x25b   :  { %4882 = vmatprep.subr.bf16.mxu0 %v5111_v18 }
 0x25c   :  { %4117 = vmatpush1.bf16.msra.mxu1 %v5084_v41 }
 0x25d   :  { %4118 = vmatprep.subr.bf16.mxu1 %v5089_v43  ;;  %v2971_v32 = vpop.f32.mrf.mxu0 }
 0x25e   :  { %v2972_v33 = vadd.f32 %v2971_v32, %v2931_v46 }
 0x25f   :  { %v2973_v50 = vpop.f32.mrf.mxu0 }
 0x260   :  { %4119 = vmatpush2.bf16.msra.mxu1 %v5087_v45  ;;  %v3013_v59 = vadd.f32 %v5474_v34, %v2972_v33  ;;  %v2974_v58 = vadd.f32 %v2973_v50, %v2933_v49  ;;  %v5101_v34 = vld [vmem:[#allocation8 + $0x3b4] ss:$8 sps:$4 sm:$0xff]  }
 0x261   :  { %4120 = vmatprep.subr.bf16.mxu1 %v5092_v48  ;;  %v2975_v25 = vpop.f32.mrf.mxu0  ;;  %v5120_v45 = vld [vmem:[#allocation11 + $0x18] sm:$0xff]  }
 0x262   :  { %v3015_v55 = vadd.f32 %v5477_v56, %v2974_v58  ;;  %v3187_v37 = vmax.f32 %v3013_v59, 0.0  ;;  %v5102_v56 = vld [vmem:[#allocation8 + $0x3a0] ss:$8 sps:$4 sm:$0xff]  }
 0x263   :  { %v2976_v19 = vpop.f32.mrf.mxu0 }
 0x264   :  { %4121 = vmatpush2.bf16.msra.mxu1 %v5090_v52  ;;  %v3188_v60 = vmax.f32 %v3015_v55, 0.0  ;;  %v3195_v63 = vpack.c.bf16 %v3187_v37, %v3187_v37  ;;  %v5122_v52 = vld [vmem:[#allocation11 + $0x10] sm:$0xff]  }
 0x265   :  { %4122 = vmatprep.subr.bf16.mxu1 %v5095_v54 }
 0x266   :  { %v3196_v47 = vpack.c.bf16 %v3188_v60, %v3188_v60  ;;  %v3327_v60 = vld [vmem:[#allocation10] sm:$0x3] }
 0x268   :  { %4123 = vmatpush2.bf16.msra.mxu1 %v5093_v44  ;;  %4093 = vmatprep.mubr.bf16.mxu0 %v3196_v47  ;;  %v3336_v47 = vrot.slane %v3327_v60, %v529_v3 }
 0x269   :  { %4124 = vmatprep.subr.bf16.mxu1 %v5098_v61  ;;  %4094 = vmatmul.mubr.bf16.vlgmr.msra.gmra.mxu0 %v3195_v63  ;;  %v3332_v61 = vrot.slane %v3327_v60, %v525_v62 }
 0x26a   :  { %4883 = vmatpush3.bf16.msra.mxu0 %v5112_v20 }
 0x26b   :  { %4884 = vmatprep.subr.bf16.mxu0 %v5113_v21 }
 0x26c   :  { %4125 = vmatpush2.bf16.msra.mxu1 %v5096_v1 }
 0x26d   :  { %4126 = vmatprep.subr.bf16.mxu1 %v5101_v34 }
 0x26e   :  { %4885 = vmatpush3.bf16.msra.mxu0 %v5114_v22 }
 0x26f   :  { %4886 = vmatprep.subr.bf16.mxu0 %v5115_v24 }
 0x270   :  { %4127 = vmatpush2.bf16.msra.mxu1 %v5099_v2 }
 0x271   :  { %4128 = vmatprep.subr.bf16.mxu1 %v5104_v4 }
 0x272   :  { %4887 = vmatpush3.bf16.msra.mxu0 %v5116_v0 }
 0x273   :  { %4888 = vmatprep.subr.bf16.mxu0 %v5117_v40 }
 0x274   :  { %4129 = vmatpush2.bf16.msra.mxu1 %v5102_v56 }
 0x275   :  { %4130 = vmatprep.subr.bf16.mxu1 %v5107_v5 }
 0x276   :  { %4889 = vmatpush3.bf16.msra.mxu0 %v5118_v57 }
 0x277   :  { %v3053_v53 = vpop.f32.mrf.mxu1  ;;  %4890 = vmatprep.subr.bf16.mxu0 %v5119_v39 }
 0x278   :  { %4131 = vmatpush2.bf16.msra.mxu1 %v5105_v6  ;;  %v3054_v31 = vadd.f32 %v3053_v53, %v550_v16  ;;  %v5124_v53 = vld [vmem:[#allocation11 + $0x8] sm:$0xff]  }
 0x279   :  { %v3055_v9 = vpop.f32.mrf.mxu1  ;;  %4132 = vmatprep.subr.bf16.mxu1 %v5110_v7  ;;  %v5123_v7 = vld [vmem:[#allocation11 + $0x48] sm:$0xff]  }
 0x27a   :  { %v3056_v36 = vadd.f32 %v3055_v9, %v554_v29  ;;  %4891 = vmatpush3.bf16.msra.mxu0 %v5120_v45  ;;  %v5126_v9 = vld [vmem:[#allocation11] sm:$0xff]  }
 0x27b   :  { %v3057_v10 = vpop.f32.mrf.mxu1  ;;  %4892 = vmatprep.subr.bf16.mxu0 %v5121_v28 }
 0x27c   :  { %4133 = vmatpush2.bf16.msra.mxu1 %v5108_v8  ;;  %v5125_v8 = vld [vmem:[#allocation11 + $0x40] sm:$0xff]  }
 0x27d   :  { %v3058_v11 = vpop.f32.mrf.mxu1 }
 0x27e   :  { %4893 = vmatpush3.bf16.msra.mxu0 %v5122_v52 }
 0x27f   :  { %4894 = vmatprep.subr.bf16.mxu0 %v5123_v7 }
 0x282   :  { %4895 = vmatpush3.bf16.msra.mxu0 %v5124_v53 }
 0x283   :  { %4896 = vmatprep.subr.bf16.mxu0 %v5125_v8 }
 0x286   :  { %4897 = vmatpush3.bf16.msra.mxu0 %v5126_v9 }
 0x29d   :  { %v3094_v12 = vpop.f32.mrf.mxu0 }
 0x29e   :  { %v3095_v38 = vadd.f32 %v3094_v12, %v3054_v31 }
 0x29f   :  { %v3096_v13 = vpop.f32.mrf.mxu0 }
 0x2a0   :  { %v3097_v42 = vadd.f32 %v3096_v13, %v3056_v36 }
 0x2a1   :  { %v3098_v15 = vpop.f32.mrf.mxu0 }
 0x2a3   :  { %v3099_v17 = vpop.f32.mrf.mxu0 }
 0x2b7   :  { %v3135_v26 = vpop.f32.mrf.mxu1 }
 0x2b8   :  { %v3136_v43 = vadd.f32 %v3135_v26, %v3095_v38  ;;  %v4865_v26 = vld [vmem:[#allocation13] ss:$0 sm:$0xff] }
 0x2b9   :  { %v3137_v30 = vpop.f32.mrf.mxu1 }
 0x2ba   :  { %v3138_v46 = vadd.f32 %v3137_v30, %v3097_v42 }
 0x2bb   :  { %v3139_v35 = vpop.f32.mrf.mxu1 }
 0x2bd   :  { %v3140_v41 = vpop.f32.mrf.mxu1 }
 0x2bf   :  { %v3176_v23 = vpop.f32.mrf.mxu1 }
 0x2c0   :  { %v3177_v48 = vadd.f32 %v3176_v23, %v3136_v43 }
 0x2c1   :  { %v3178_v32 = vpop.f32.mrf.mxu1 }
 0x2c2   :  { %v3179_v49 = vadd.f32 %v3178_v32, %v3138_v46  ;;  %v3189_v33 = vmax.f32 %v3177_v48, 0.0 }
 0x2c3   :  { %v3180_v50 = vpop.f32.mrf.mxu1 }
 0x2c4   :  { %v3190_v59 = vmax.f32 %v3179_v49, 0.0  ;;  %v3197_v25 = vpack.c.bf16 %v3189_v33, %v3189_v33 }
 0x2c5   :  { %v3181_v58 = vpop.f32.mrf.mxu1 }
 0x2c6   :  { %v3198_v54 = vpack.c.bf16 %v3190_v59, %v3190_v59 }
 0x2c8   :  { %4134 = vmatprep.mubr.bf16.mxu1 %v3198_v54 }
 0x2c9   :  { %4135 = vmatmul.mubr.bf16.vlgmr.msra.gmra.mxu1 %v3197_v25 }
 0x2dd   :  { %v4013_v55 = vpop.f32.mrf.mxu0 }
 0x2de   :  { %v4014_v63 = vadd.f32 %v4013_v55, %v3332_v61 }
 0x2df   :  { %v4015_v37 = vpop.f32.mrf.mxu0 }
 0x2e0   :  { %v4016_v34 = vadd.f32 %v4015_v37, %v3336_v47 }
 0x2e1   :  { %v4017_v19 = vpop.f32.mrf.mxu0 }
 0x2e3   :  { %v4018_v44 = vpop.f32.mrf.mxu0 }
 0x2ff   :  { %v4054_v1 = vpop.f32.mrf.mxu1 }
 0x300   :  { %v4055_v2 = vadd.f32 %v4054_v1, %v4014_v63 }
 0x301   :  { %v4056_v4 = vpop.f32.mrf.mxu1 }
 0x302   :  { %v4057_v56 = vadd.f32 %v4056_v4, %v4016_v34 }
 0x303   :  { %v4058_v5 = vpop.f32.mrf.mxu1 }
 0x305   :  { %v4059_v6 = vpop.f32.mrf.mxu1 }
 0x329   :  { %v4095_v62 = vpop.f32.mrf.mxu0 }
 0x32a   :  { %v4096_v10 = vadd.f32 %v4095_v62, %v4055_v2 }
 0x32b   :  { %v4097_v51 = vpop.f32.mrf.mxu0 }
 0x32c   :  { %v4098_v3 = vadd.f32 %v4097_v51, %v4057_v56 }
 0x32d   :  { %v4099_v11 = vpop.f32.mrf.mxu0 }
 0x32f   :  { %v4100_v12 = vpop.f32.mrf.mxu0 }
 0x389   :  { %v4136_v13 = vpop.f32.mrf.mxu1 }
 0x38a   :  { %v4137_v15 = vadd.f32 %v4136_v13, %v4096_v10 }
 0x38b   :  { %v4138_v17 = vpop.f32.mrf.mxu1 }
 0x38c   :  { %v4139_v18 = vadd.f32 %v4138_v17, %v4098_v3  ;;  %v4143_v20 = vmax.f32 %v4137_v15, 0.0 }
 0x38d   :  { %v4140_v21 = vpop.f32.mrf.mxu1 }
 0x38e   :  { %v4144_v27 = vmax.f32 %v4139_v18, 0.0  ;;  %v4145_v24 = vpack.c.bf16 %v4143_v20, %v4143_v20 }
 0x38f   :  { %v4141_v22 = vpop.f32.mrf.mxu1 }
 0x390   :  { %v4146_v14 = vpack.c.bf16 %v4144_v27, %v4144_v27 }
 0x392   :  { %4314 = vmatprep.mubr.bf16.mxu0 %v4146_v14 }
 0x393   :  { %4315 = vmatmul.mubr.bf16.vlgmr.msra.gmra.mxu0 %v4145_v24 }
 0x453   :  { %v4898_v16 = vpop.f32.mrf.mxu0 }
 0x455   :  { %v4899_v0 = vpop.f32.mrf.mxu0 }
 0x456   :  { %v4900_v29 = vadd.f32 %v4899_v0, %v4898_v16 }
 0x457   :  { %v4901_v40 = vpop.f32.mrf.mxu0 }
 0x458   :  { %v4317_v30 = vadd.f32 %v4900_v29, %v4865_v26 }
 0x459   :  { %v4902_v31 = vpop.f32.mrf.mxu0 }
 0x45a   :  { %4322 = vst [vmem:[#allocation14] sm:$0xff] %v4317_v30 }
 0x45b   :  { %5279 = shalt.err (!%p5276_p11)
}
 0x45c   :  { %4332 = dma.vmem_to_hbm [thread:$0]  %s4330_s6, 128, %s5509_s7, [#allocation4]  }
 0x45d   :  { %5296 = dma.done.wait [#allocation4], 128  }
 0x45e   :  { %5297 = vsyncadd [#allocation4], 4294967168 }
 0x45f   :  { %4336 = vsyncpa [#allocation3], 1 }
 0x460   :  { %4337 = vsyncpa [#allocation6], 1 }
 0x461   :  { %4338 = vsyncpa [#allocation9], 1 }
 0x462   :  { %4339 = vsyncpa [#allocation12], 1 }
 0x463   :  { %4340 = vsyncpa [#allocation4], 1 }

</bundles_post_ra>
